<compile_context>
chip_gen: v7x
topology: tpu7x:2x2x1
jax: 0.10.0
libtpu: 0.0.40
codegen_flags: <defaults>
</compile_context>

<pallas_src>
import jax
import jax.numpy as jnp
from jax.experimental import pallas as pl
from jax.experimental.pallas import tpu as pltpu


# --------------------------------------------------------------------------
# Fused kernel:  mlp1 + spatial shifts + SplitAttention gate + mlp2
# Bt images (packed on the lane axis) per grid step.
# --------------------------------------------------------------------------
def _make_s2_kernel(W, H, C, Bt):
    WH = W * H
    N = Bt * WH          # packed lane width handled per grid step
    C3 = 3 * C
    q = C // 4

    def kernel(x_ref, mwp_ref, mwn_ref, mhp_ref, mhn_ref,
               w1_ref, b1_ref, sa1_ref, sa2_ref, w2_ref, b2_ref,
               out_ref, y_ref):
        # ---- pack the Bt images along the lane axis: (C, Bt*WH) bf16 -------
        if Bt == 1:
            x = x_ref[0]
        else:
            x = jnp.concatenate([x_ref[b] for b in range(Bt)], axis=1)

        # ---- mlp1: y = W1 @ x + b1, written straight into the f32 scratch --
        y_ref[...] = (jnp.dot(w1_ref[...], x,
                              preferred_element_type=jnp.float32)
                      + b1_ref[...])                               # (3C, N)

        # ---- spatial shifts, in place, one channel quarter at a time -------
        # Rolling the whole packed lane axis is safe: wrap-around across image
        # boundaries lands only on border positions, which the keep-masks
        # overwrite with their original values.
        k_wp = mwp_ref[...] > 0.5     # keep original where w == 0
        k_wn = mwn_ref[...] > 0.5     # keep original where w == W-1
        k_hp = mhp_ref[...] > 0.5     # keep original where h == 0
        k_hn = mhn_ref[...] > 0.5     # keep original where h == H-1

        def shift(row0, amt, keep):
            t = y_ref[row0:row0 + q, :]
            y_ref[row0:row0 + q, :] = jnp.where(
                keep, t, pltpu.roll(t, amt % N, axis=1))

        # k = 0 : spatial_shift1 on channels [0, C)
        shift(0 * q, H, k_wp)
        shift(1 * q, -H, k_wn)
        shift(2 * q, 1, k_hp)
        shift(3 * q, -1, k_hn)
        # k = 1 : spatial_shift2 on channels [C, 2C)
        shift(C + 0 * q, 1, k_hp)
        shift(C + 1 * q, -1, k_hn)
        shift(C + 2 * q, H, k_wp)
        shift(C + 3 * q, -H, k_wn)
        # k = 2 : channels [2C, 3C) stay untouched.

        # ---- SplitAttention gate + per-image softmax scaling (tiny) ---------
        for b in range(Bt):
            sl = slice(b * WH, (b + 1) * WH)
            rb = jnp.sum(y_ref[:, sl], axis=1, keepdims=True)       # (3C, 1)
            ab = rb[:C] + rb[C:2 * C] + rb[2 * C:]                  # (C, 1)
            # TODO(synk): torch nn.GELU default is exact erf GELU; the tanh
            # approximation is used because erf is not guaranteed to lower
            # inside Mosaic (difference is within test tolerance).
            gb = jax.nn.gelu(
                jnp.dot(sa1_ref[...], ab, preferred_element_type=jnp.float32),
                approximate=True)                                   # (C, 1)
            hb = jnp.dot(sa2_ref[...], gb,
                         preferred_element_type=jnp.float32)        # (3C, 1)
            h0, h1, h2 = hb[:C], hb[C:2 * C], hb[2 * C:]
            mx = jnp.maximum(jnp.maximum(h0, h1), h2)
            e0 = jnp.exp(h0 - mx)
            e1 = jnp.exp(h1 - mx)
            e2 = jnp.exp(h2 - mx)
            inv = 1.0 / (e0 + e1 + e2)
            bar = jnp.concatenate([e0 * inv, e1 * inv, e2 * inv],
                                  axis=0)                           # (3C, 1)
            # apply attention weights in place (broadcast over spatial lanes)
            y_ref[:, sl] = y_ref[:, sl] * bar

        # ---- k-sum + mlp2 folded into one matmul: [W2 W2 W2] @ weighted ----
        out = (jnp.dot(w2_ref[...], y_ref[...].astype(jnp.bfloat16),
                       preferred_element_type=jnp.float32)
               + b2_ref[...])                                       # (C, N)
        for b in range(Bt):
            out_ref[b] = out[:, b * WH:(b + 1) * WH]

    return kernel


# --------------------------------------------------------------------------
# Batch-tile selection: largest divisor of B that keeps >= 2 grid steps
# (v7x megacore) and fits comfortably inside scoped VMEM.
# --------------------------------------------------------------------------
def _auto_batch_tile(B, WH, C, vmem_budget_bytes=8 * 1024 * 1024):
    best = 1
    for bt in range(1, B + 1):
        if B % bt:
            continue
        if B >= 2 and B // bt < 2:
            continue                       # keep >= 2 grid steps when possible
        n = bt * WH
        vmem = (3 * C * n * 4              # (3C, N) f32 scratch
                + 2 * C * n * 2            # x bf16 double-buffer
                + 2 * C * n * 4            # out f32 double-buffer
                + 8 * n * 4)               # border masks (double-buffered)
        if vmem > vmem_budget_bytes:
            continue
        best = bt
    return best


# --------------------------------------------------------------------------
# Wrapper: NCHW in / NCHW out, no HBM transposes (only free reshapes).
# --------------------------------------------------------------------------
def s2_attention_pallas(x_nchw, p, *, batch_tile=None):
    B, C, W, H = x_nchw.shape
    WH = W * H
    C3 = 3 * C
    # TODO(synk): pad instead of asserting for shapes violating lane/sublane tiling.
    assert C % 32 == 0, "C must be a multiple of 32 (f32 sublane tiles per quarter)"
    assert WH % 128 == 0, "W*H must be a multiple of 128 (lane-dense blocks)"

    bt = _auto_batch_tile(B, WH, C) if batch_tile is None else batch_tile
    assert B % bt == 0
    steps = B // bt
    N = bt * WH

    # bf16 input halves the per-step DMA; the MXU consumes bf16 anyway.
    x = x_nchw.reshape(B, C, WH).astype(jnp.bfloat16)

    # Host-precomputed border keep-masks (1.0 = keep original border value),
    # tiled per image along the packed lane axis (no in-kernel div/mod).
    pos = jnp.arange(WH, dtype=jnp.int32)
    w_idx, h_idx = pos // H, pos % H

    def tile_mask(m):
        return jnp.tile(m.astype(jnp.float32)[None, :], (1, bt))

    m_wp = tile_mask(w_idx == 0)
    m_wn = tile_mask(w_idx == W - 1)
    m_hp = tile_mask(h_idx == 0)
    m_hn = tile_mask(h_idx == H - 1)

    w1 = p["mlp1_w"].astype(jnp.bfloat16)                       # (3C, C)
    b1 = p["mlp1_b"].reshape(C3, 1).astype(jnp.float32)         # (3C, 1)
    sa1 = p["sa1_w"].astype(jnp.float32)                        # (C, C)
    sa2 = p["sa2_w"].astype(jnp.float32)                        # (3C, C)
    w2t = jnp.concatenate([p["mlp2_w"]] * 3, axis=1).astype(jnp.bfloat16)  # (C, 3C)
    b2 = p["mlp2_b"].reshape(C, 1).astype(jnp.float32)          # (C, 1)

    const = lambda i: (0, 0)

    out = pl.pallas_call(
        _make_s2_kernel(W, H, C, bt),
        out_shape=jax.ShapeDtypeStruct((B, C, WH), jnp.float32),
        grid=(steps,),
        in_specs=[
            pl.BlockSpec((bt, C, WH), lambda i: (i, 0, 0)),     # x (bf16)
            pl.BlockSpec((1, N), const),                        # keep: w == 0
            pl.BlockSpec((1, N), const),                        # keep: w == W-1
            pl.BlockSpec((1, N), const),                        # keep: h == 0
            pl.BlockSpec((1, N), const),                        # keep: h == H-1
            pl.BlockSpec((C3, C), const),                       # W1 (bf16)
            pl.BlockSpec((C3, 1), const),                       # b1
            pl.BlockSpec((C, C), const),                        # SplitAttention mlp1 W
            pl.BlockSpec((C3, C), const),                       # SplitAttention mlp2 W
            pl.BlockSpec((C, C3), const),                       # [W2 W2 W2] (bf16)
            pl.BlockSpec((C, 1), const),                        # b2
        ],
        out_specs=pl.BlockSpec((bt, C, WH), lambda i: (i, 0, 0)),
        scratch_shapes=[pltpu.VMEM((C3, N), jnp.float32)],
        compiler_params=pltpu.CompilerParams(
            dimension_semantics=("parallel",)),
    )(x, m_wp, m_wn, m_hp, m_hn, w1, b1, sa1, sa2, w2t, b2)

    return out.reshape(B, C, W, H)


# --------------------------------------------------------------------------
# Pure-JAX reference (exact-GELU, f32) for the correctness check.
# --------------------------------------------------------------------------
def s2_attention_ref(x_nchw, p):
    B, C, W, H = x_nchw.shape
    x = jnp.transpose(x_nchw, (0, 2, 3, 1))                      # (B, W, H, C)
    y = x @ p["mlp1_w"].T + p["mlp1_b"]

    def shift(t, order):                                          # t: (B,W,H,c)
        qq = t.shape[-1] // 4
        d = {
            "wp": jnp.concatenate([t[:, :1], t[:, :-1]], axis=1),
            "wn": jnp.concatenate([t[:, 1:], t[:, -1:]], axis=1),
            "hp": jnp.concatenate([t[:, :, :1], t[:, :, :-1]], axis=2),
            "hn": jnp.concatenate([t[:, :, 1:], t[:, :, -1:]], axis=2),
        }
        return jnp.concatenate(
            [d[order[i]][..., i * qq:(i + 1) * qq] for i in range(4)], axis=-1)

    x1 = shift(y[..., :C], ("wp", "wn", "hp", "hn"))
    x2 = shift(y[..., C:2 * C], ("hp", "hn", "wp", "wn"))
    x3 = y[..., 2 * C:]
    x_all = jnp.stack([x1, x2, x3], axis=1)                      # (B,3,W,H,C)
    a = jnp.sum(x_all, axis=(1, 2, 3))                           # (B, C)
    hat = jax.nn.gelu(a @ p["sa1_w"].T, approximate=False) @ p["sa2_w"].T
    bar = jax.nn.softmax(hat.reshape(B, 3, C), axis=1)
    out = jnp.sum(bar[:, :, None, None, :] * x_all, axis=1)      # (B,W,H,C)
    out = out @ p["mlp2_w"].T + p["mlp2_b"]
    return jnp.transpose(out, (0, 3, 1, 2))


if __name__ == "__main__":
    B, C, W, H = 4, 32, 16, 16        # B=4 -> 2 grid steps of 2 packed images
    key = jax.random.PRNGKey(0)
    ks = jax.random.split(key, 7)
    params = {
        # torch nn.Linear stores weight as (out_features, in_features)
        "mlp1_w": 0.05 * jax.random.normal(ks[0], (3 * C, C), jnp.float32),
        "mlp1_b": 0.05 * jax.random.normal(ks[1], (3 * C,), jnp.float32),
        "sa1_w":  0.05 * jax.random.normal(ks[2], (C, C), jnp.float32),      # SplitAttention.mlp1 (no bias)
        "sa2_w":  0.05 * jax.random.normal(ks[3], (3 * C, C), jnp.float32),  # SplitAttention.mlp2 (no bias)
        "mlp2_w": 0.05 * jax.random.normal(ks[4], (C, C), jnp.float32),
        "mlp2_b": 0.05 * jax.random.normal(ks[5], (C,), jnp.float32),
    }
    x = jax.random.normal(ks[6], (B, C, W, H), jnp.float32)

    out = jax.block_until_ready(jax.jit(s2_attention_pallas)(x, params))
    ref = jax.block_until_ready(s2_attention_ref(x, params))

    assert out.shape == (B, C, W, H), out.shape
    max_err = float(jnp.max(jnp.abs(out - ref)))
    # tolerance accounts for bf16 MXU operands + tanh-approx GELU in the gate
    if not bool(jnp.allclose(out, ref, atol=1e-2, rtol=1e-2)):
        raise AssertionError(f"Pallas output mismatch, max abs err = {max_err}")
    print("KERNEL_OK")
</pallas_src>

<mosaic_0001>
module attributes {stable_mosaic.version = 11 : i64} {
  func.func @kernel(%arg0: i32, %arg1: memref<2x32x256xbf16, #tpu.memory_space<vmem>>, %arg2: memref<1x512xf32, #tpu.memory_space<vmem>>, %arg3: memref<1x512xf32, #tpu.memory_space<vmem>>, %arg4: memref<1x512xf32, #tpu.memory_space<vmem>>, %arg5: memref<1x512xf32, #tpu.memory_space<vmem>>, %arg6: memref<96x32xbf16, #tpu.memory_space<vmem>>, %arg7: memref<96x1xf32, #tpu.memory_space<vmem>>, %arg8: memref<32x32xf32, #tpu.memory_space<vmem>>, %arg9: memref<96x32xf32, #tpu.memory_space<vmem>>, %arg10: memref<32x96xbf16, #tpu.memory_space<vmem>>, %arg11: memref<32x1xf32, #tpu.memory_space<vmem>>, %arg12: memref<2x32x256xf32, #tpu.memory_space<vmem>>, %arg13: memref<96x512xf32, #tpu.memory_space<vmem>>) attributes {dimension_semantics = [#tpu.dimension_semantics<parallel>], iteration_bounds = array<i64: 2>, scalar_prefetch = 0 : i64, scratch_operands = 1 : i64, tpu.core_type = #tpu.core_type<tc>, window_params = [{transform_indices = @transform_0, window_bounds = array<i64: 2, 32, 256>}, {pipeline_mode = #tpu.pipeline_mode<synchronous>, transform_indices = @transform_1, window_bounds = array<i64: 1, 512>}, {pipeline_mode = #tpu.pipeline_mode<synchronous>, transform_indices = @transform_2, window_bounds = array<i64: 1, 512>}, {pipeline_mode = #tpu.pipeline_mode<synchronous>, transform_indices = @transform_3, window_bounds = array<i64: 1, 512>}, {pipeline_mode = #tpu.pipeline_mode<synchronous>, transform_indices = @transform_4, window_bounds = array<i64: 1, 512>}, {pipeline_mode = #tpu.pipeline_mode<synchronous>, transform_indices = @transform_5, window_bounds = array<i64: 96, 32>}, {pipeline_mode = #tpu.pipeline_mode<synchronous>, transform_indices = @transform_6, window_bounds = array<i64: 96, 1>}, {pipeline_mode = #tpu.pipeline_mode<synchronous>, transform_indices = @transform_7, window_bounds = array<i64: 32, 32>}, {pipeline_mode = #tpu.pipeline_mode<synchronous>, transform_indices = @transform_8, window_bounds = array<i64: 96, 32>}, {pipeline_mode = #tpu.pipeline_mode<synchronous>, transform_indices = @transform_9, window_bounds = array<i64: 32, 96>}, {pipeline_mode = #tpu.pipeline_mode<synchronous>, transform_indices = @transform_10, window_bounds = array<i64: 32, 1>}, {transform_indices = @transform_11, window_bounds = array<i64: 2, 32, 256>}]} {
    %c0 = arith.constant 0 : index
    %c0_0 = arith.constant 0 : index
    %c0_1 = arith.constant 0 : index
    %0 = vector.load %arg1[%c0, %c0_0, %c0_1] : memref<2x32x256xbf16, #tpu.memory_space<vmem>>, vector<1x32x256xbf16>
    %1 = vector.shape_cast %0 : vector<1x32x256xbf16> to vector<32x256xbf16>
    %c1 = arith.constant 1 : index
    %c0_2 = arith.constant 0 : index
    %c0_3 = arith.constant 0 : index
    %2 = vector.load %arg1[%c1, %c0_2, %c0_3] : memref<2x32x256xbf16, #tpu.memory_space<vmem>>, vector<1x32x256xbf16>
    %3 = vector.shape_cast %2 : vector<1x32x256xbf16> to vector<32x256xbf16>
    %4 = tpu.concatenate %1, %3 in 1 : vector<32x256xbf16>, vector<32x256xbf16> -> vector<32x512xbf16>
    %c0_4 = arith.constant 0 : index
    %c0_5 = arith.constant 0 : index
    %5 = vector.load %arg6[%c0_4, %c0_5] : memref<96x32xbf16, #tpu.memory_space<vmem>>, vector<96x32xbf16>
    %cst = arith.constant dense<0.000000e+00> : vector<96x512xf32>
    %6 = tpu.matmul %5, %4, %cst {dimension_numbers = #tpu.dot_dimension_numbers<[1], [0], [0], [1], [0, 0, 1, 1], [], []>} : vector<96x32xbf16>, vector<32x512xbf16>, vector<96x512xf32> -> vector<96x512xf32>
    %c0_6 = arith.constant 0 : index
    %c0_7 = arith.constant 0 : index
    %7 = vector.load %arg7[%c0_6, %c0_7] : memref<96x1xf32, #tpu.memory_space<vmem>>, vector<96x1xf32>
    %8 = vector.broadcast %7 : vector<96x1xf32> to vector<96x512xf32>
    %9 = arith.addf %6, %8 : vector<96x512xf32>
    %c0_8 = arith.constant 0 : index
    %c0_9 = arith.constant 0 : index
    %10 = vector.load %arg13[%c0_8, %c0_9] : memref<96x512xf32, #tpu.memory_space<vmem>>, vector<96x512xf32>
    tpu.vector_store %arg13[%c0_8, %c0_9], %9 {strides = array<i32>} : memref<96x512xf32, #tpu.memory_space<vmem>>, vector<96x512xf32>,
    %c0_10 = arith.constant 0 : index
    %c0_11 = arith.constant 0 : index
    %11 = vector.load %arg2[%c0_10, %c0_11] : memref<1x512xf32, #tpu.memory_space<vmem>>, vector<1x512xf32>
    %cst_12 = arith.constant 5.000000e-01 : f32
    %12 = vector.broadcast %cst_12 : f32 to vector<1x512xf32>
    %13 = arith.cmpf ogt, %11, %12 : vector<1x512xf32>
    %c0_13 = arith.constant 0 : index
    %c0_14 = arith.constant 0 : index
    %14 = vector.load %arg3[%c0_13, %c0_14] : memref<1x512xf32, #tpu.memory_space<vmem>>, vector<1x512xf32>
    %cst_15 = arith.constant 5.000000e-01 : f32
    %15 = vector.broadcast %cst_15 : f32 to vector<1x512xf32>
    %16 = arith.cmpf ogt, %14, %15 : vector<1x512xf32>
    %c0_16 = arith.constant 0 : index
    %c0_17 = arith.constant 0 : index
    %17 = vector.load %arg4[%c0_16, %c0_17] : memref<1x512xf32, #tpu.memory_space<vmem>>, vector<1x512xf32>
    %cst_18 = arith.constant 5.000000e-01 : f32
    %18 = vector.broadcast %cst_18 : f32 to vector<1x512xf32>
    %19 = arith.cmpf ogt, %17, %18 : vector<1x512xf32>
    %c0_19 = arith.constant 0 : index
    %c0_20 = arith.constant 0 : index
    %20 = vector.load %arg5[%c0_19, %c0_20] : memref<1x512xf32, #tpu.memory_space<vmem>>, vector<1x512xf32>
    %cst_21 = arith.constant 5.000000e-01 : f32
    %21 = vector.broadcast %cst_21 : f32 to vector<1x512xf32>
    %22 = arith.cmpf ogt, %20, %21 : vector<1x512xf32>
    %c0_22 = arith.constant 0 : index
    %c0_23 = arith.constant 0 : index
    %23 = vector.load %arg13[%c0_22, %c0_23] : memref<96x512xf32, #tpu.memory_space<vmem>>, vector<8x512xf32>
    %c16_i32 = arith.constant 16 : i32
    %24 = tpu.dynamic_rotate %23 by %c16_i32 dim 1 : vector<8x512xf32>, i32 -> vector<8x512xf32>
    %25 = vector.shape_cast %13 : vector<1x512xi1> to vector<1x512xi1>
    %26 = vector.broadcast %25 : vector<1x512xi1> to vector<8x512xi1>
    %27 = arith.select %26, %23, %24 : vector<8x512xi1>, vector<8x512xf32>
    %c0_24 = arith.constant 0 : index
    %c0_25 = arith.constant 0 : index
    %28 = vector.load %arg13[%c0_24, %c0_25] : memref<96x512xf32, #tpu.memory_space<vmem>>, vector<8x512xf32>
    tpu.vector_store %arg13[%c0_24, %c0_25], %27 {strides = array<i32>} : memref<96x512xf32, #tpu.memory_space<vmem>>, vector<8x512xf32>,
    %c8 = arith.constant 8 : index
    %c0_26 = arith.constant 0 : index
    %29 = vector.load %arg13[%c8, %c0_26] : memref<96x512xf32, #tpu.memory_space<vmem>>, vector<8x512xf32>
    %c496_i32 = arith.constant 496 : i32
    %30 = tpu.dynamic_rotate %29 by %c496_i32 dim 1 : vector<8x512xf32>, i32 -> vector<8x512xf32>
    %31 = vector.shape_cast %16 : vector<1x512xi1> to vector<1x512xi1>
    %32 = vector.broadcast %31 : vector<1x512xi1> to vector<8x512xi1>
    %33 = arith.select %32, %29, %30 : vector<8x512xi1>, vector<8x512xf32>
    %c8_27 = arith.constant 8 : index
    %c0_28 = arith.constant 0 : index
    %34 = vector.load %arg13[%c8_27, %c0_28] : memref<96x512xf32, #tpu.memory_space<vmem>>, vector<8x512xf32>
    tpu.vector_store %arg13[%c8_27, %c0_28], %33 {strides = array<i32>} : memref<96x512xf32, #tpu.memory_space<vmem>>, vector<8x512xf32>,
    %c16 = arith.constant 16 : index
    %c0_29 = arith.constant 0 : index
    %35 = vector.load %arg13[%c16, %c0_29] : memref<96x512xf32, #tpu.memory_space<vmem>>, vector<8x512xf32>
    %c1_i32 = arith.constant 1 : i32
    %36 = tpu.dynamic_rotate %35 by %c1_i32 dim 1 : vector<8x512xf32>, i32 -> vector<8x512xf32>
    %37 = vector.shape_cast %19 : vector<1x512xi1> to vector<1x512xi1>
    %38 = vector.broadcast %37 : vector<1x512xi1> to vector<8x512xi1>
    %39 = arith.select %38, %35, %36 : vector<8x512xi1>, vector<8x512xf32>
    %c16_30 = arith.constant 16 : index
    %c0_31 = arith.constant 0 : index
    %40 = vector.load %arg13[%c16_30, %c0_31] : memref<96x512xf32, #tpu.memory_space<vmem>>, vector<8x512xf32>
    tpu.vector_store %arg13[%c16_30, %c0_31], %39 {strides = array<i32>} : memref<96x512xf32, #tpu.memory_space<vmem>>, vector<8x512xf32>,
    %c24 = arith.constant 24 : index
    %c0_32 = arith.constant 0 : index
    %41 = vector.load %arg13[%c24, %c0_32] : memref<96x512xf32, #tpu.memory_space<vmem>>, vector<8x512xf32>
    %c511_i32 = arith.constant 511 : i32
    %42 = tpu.dynamic_rotate %41 by %c511_i32 dim 1 : vector<8x512xf32>, i32 -> vector<8x512xf32>
    %43 = vector.shape_cast %22 : vector<1x512xi1> to vector<1x512xi1>
    %44 = vector.broadcast %43 : vector<1x512xi1> to vector<8x512xi1>
    %45 = arith.select %44, %41, %42 : vector<8x512xi1>, vector<8x512xf32>
    %c24_33 = arith.constant 24 : index
    %c0_34 = arith.constant 0 : index
    %46 = vector.load %arg13[%c24_33, %c0_34] : memref<96x512xf32, #tpu.memory_space<vmem>>, vector<8x512xf32>
    tpu.vector_store %arg13[%c24_33, %c0_34], %45 {strides = array<i32>} : memref<96x512xf32, #tpu.memory_space<vmem>>, vector<8x512xf32>,
    %c32 = arith.constant 32 : index
    %c0_35 = arith.constant 0 : index
    %47 = vector.load %arg13[%c32, %c0_35] : memref<96x512xf32, #tpu.memory_space<vmem>>, vector<8x512xf32>
    %c1_i32_36 = arith.constant 1 : i32
    %48 = tpu.dynamic_rotate %47 by %c1_i32_36 dim 1 : vector<8x512xf32>, i32 -> vector<8x512xf32>
    %49 = vector.shape_cast %19 : vector<1x512xi1> to vector<1x512xi1>
    %50 = vector.broadcast %49 : vector<1x512xi1> to vector<8x512xi1>
    %51 = arith.select %50, %47, %48 : vector<8x512xi1>, vector<8x512xf32>
    %c32_37 = arith.constant 32 : index
    %c0_38 = arith.constant 0 : index
    %52 = vector.load %arg13[%c32_37, %c0_38] : memref<96x512xf32, #tpu.memory_space<vmem>>, vector<8x512xf32>
    tpu.vector_store %arg13[%c32_37, %c0_38], %51 {strides = array<i32>} : memref<96x512xf32, #tpu.memory_space<vmem>>, vector<8x512xf32>,
    %c40 = arith.constant 40 : index
    %c0_39 = arith.constant 0 : index
    %53 = vector.load %arg13[%c40, %c0_39] : memref<96x512xf32, #tpu.memory_space<vmem>>, vector<8x512xf32>
    %c511_i32_40 = arith.constant 511 : i32
    %54 = tpu.dynamic_rotate %53 by %c511_i32_40 dim 1 : vector<8x512xf32>, i32 -> vector<8x512xf32>
    %55 = vector.shape_cast %22 : vector<1x512xi1> to vector<1x512xi1>
    %56 = vector.broadcast %55 : vector<1x512xi1> to vector<8x512xi1>
    %57 = arith.select %56, %53, %54 : vector<8x512xi1>, vector<8x512xf32>
    %c40_41 = arith.constant 40 : index
    %c0_42 = arith.constant 0 : index
    %58 = vector.load %arg13[%c40_41, %c0_42] : memref<96x512xf32, #tpu.memory_space<vmem>>, vector<8x512xf32>
    tpu.vector_store %arg13[%c40_41, %c0_42], %57 {strides = array<i32>} : memref<96x512xf32, #tpu.memory_space<vmem>>, vector<8x512xf32>,
    %c48 = arith.constant 48 : index
    %c0_43 = arith.constant 0 : index
    %59 = vector.load %arg13[%c48, %c0_43] : memref<96x512xf32, #tpu.memory_space<vmem>>, vector<8x512xf32>
    %c16_i32_44 = arith.constant 16 : i32
    %60 = tpu.dynamic_rotate %59 by %c16_i32_44 dim 1 : vector<8x512xf32>, i32 -> vector<8x512xf32>
    %61 = vector.shape_cast %13 : vector<1x512xi1> to vector<1x512xi1>
    %62 = vector.broadcast %61 : vector<1x512xi1> to vector<8x512xi1>
    %63 = arith.select %62, %59, %60 : vector<8x512xi1>, vector<8x512xf32>
    %c48_45 = arith.constant 48 : index
    %c0_46 = arith.constant 0 : index
    %64 = vector.load %arg13[%c48_45, %c0_46] : memref<96x512xf32, #tpu.memory_space<vmem>>, vector<8x512xf32>
    tpu.vector_store %arg13[%c48_45, %c0_46], %63 {strides = array<i32>} : memref<96x512xf32, #tpu.memory_space<vmem>>, vector<8x512xf32>,
    %c56 = arith.constant 56 : index
    %c0_47 = arith.constant 0 : index
    %65 = vector.load %arg13[%c56, %c0_47] : memref<96x512xf32, #tpu.memory_space<vmem>>, vector<8x512xf32>
    %c496_i32_48 = arith.constant 496 : i32
    %66 = tpu.dynamic_rotate %65 by %c496_i32_48 dim 1 : vector<8x512xf32>, i32 -> vector<8x512xf32>
    %67 = vector.shape_cast %16 : vector<1x512xi1> to vector<1x512xi1>
    %68 = vector.broadcast %67 : vector<1x512xi1> to vector<8x512xi1>
    %69 = arith.select %68, %65, %66 : vector<8x512xi1>, vector<8x512xf32>
    %c56_49 = arith.constant 56 : index
    %c0_50 = arith.constant 0 : index
    %70 = vector.load %arg13[%c56_49, %c0_50] : memref<96x512xf32, #tpu.memory_space<vmem>>, vector<8x512xf32>
    tpu.vector_store %arg13[%c56_49, %c0_50], %69 {strides = array<i32>} : memref<96x512xf32, #tpu.memory_space<vmem>>, vector<8x512xf32>,
    %c0_51 = arith.constant 0 : index
    %c0_52 = arith.constant 0 : index
    %71 = vector.load %arg13[%c0_51, %c0_52] : memref<96x512xf32, #tpu.memory_space<vmem>>, vector<96x256xf32>
    %cst_53 = arith.constant dense<0.000000e+00> : vector<96xf32>
    %72 = vector.multi_reduction <add>, %71, %cst_53 [1] : vector<96x256xf32> to vector<96xf32>
    %73 = vector.shape_cast %72 : vector<96xf32> to vector<96x1xf32>
    %74 = vector.extract_strided_slice %73 {offsets = [0, 0], sizes = [32, 1], strides = [1, 1]} : vector<96x1xf32> to vector<32x1xf32>
    %75 = vector.extract_strided_slice %73 {offsets = [32, 0], sizes = [32, 1], strides = [1, 1]} : vector<96x1xf32> to vector<32x1xf32>
    %76 = arith.addf %74, %75 : vector<32x1xf32>
    %77 = vector.extract_strided_slice %73 {offsets = [64, 0], sizes = [32, 1], strides = [1, 1]} : vector<96x1xf32> to vector<32x1xf32>
    %78 = arith.addf %76, %77 : vector<32x1xf32>
    %c0_54 = arith.constant 0 : index
    %c0_55 = arith.constant 0 : index
    %79 = vector.load %arg8[%c0_54, %c0_55] : memref<32x32xf32, #tpu.memory_space<vmem>>, vector<32x32xf32>
    %cst_56 = arith.constant dense<0.000000e+00> : vector<32x1xf32>
    %80 = tpu.matmul %79, %78, %cst_56 {dimension_numbers = #tpu.dot_dimension_numbers<[1], [0], [0], [1], [0, 0, 1, 1], [], []>} : vector<32x32xf32>, vector<32x1xf32>, vector<32x1xf32> -> vector<32x1xf32>
    %81 = arith.mulf %80, %80 : vector<32x1xf32>
    %82 = arith.mulf %80, %81 : vector<32x1xf32>
    %cst_57 = arith.constant 4.471500e-02 : f32
    %83 = vector.broadcast %cst_57 : f32 to vector<32x1xf32>
    %84 = arith.mulf %83, %82 : vector<32x1xf32>
    %85 = arith.addf %80, %84 : vector<32x1xf32>
    %cst_58 = arith.constant 0.797884583 : f32
    %86 = vector.broadcast %cst_58 : f32 to vector<32x1xf32>
    %87 = arith.mulf %86, %85 : vector<32x1xf32>
    %88 = math.tanh %87 : vector<32x1xf32>
    %cst_59 = arith.constant 1.000000e+00 : f32
    %89 = vector.broadcast %cst_59 : f32 to vector<32x1xf32>
    %90 = arith.addf %89, %88 : vector<32x1xf32>
    %cst_60 = arith.constant 5.000000e-01 : f32
    %91 = vector.broadcast %cst_60 : f32 to vector<32x1xf32>
    %92 = arith.mulf %91, %90 : vector<32x1xf32>
    %93 = arith.mulf %80, %92 : vector<32x1xf32>
    %c0_61 = arith.constant 0 : index
    %c0_62 = arith.constant 0 : index
    %94 = vector.load %arg9[%c0_61, %c0_62] : memref<96x32xf32, #tpu.memory_space<vmem>>, vector<96x32xf32>
    %cst_63 = arith.constant dense<0.000000e+00> : vector<96x1xf32>
    %95 = tpu.matmul %94, %93, %cst_63 {dimension_numbers = #tpu.dot_dimension_numbers<[1], [0], [0], [1], [0, 0, 1, 1], [], []>} : vector<96x32xf32>, vector<32x1xf32>, vector<96x1xf32> -> vector<96x1xf32>
    %96 = vector.extract_strided_slice %95 {offsets = [0, 0], sizes = [32, 1], strides = [1, 1]} : vector<96x1xf32> to vector<32x1xf32>
    %97 = vector.extract_strided_slice %95 {offsets = [32, 0], sizes = [32, 1], strides = [1, 1]} : vector<96x1xf32> to vector<32x1xf32>
    %98 = vector.extract_strided_slice %95 {offsets = [64, 0], sizes = [32, 1], strides = [1, 1]} : vector<96x1xf32> to vector<32x1xf32>
    %99 = arith.maximumf %96, %97 : vector<32x1xf32>
    %100 = arith.maximumf %99, %98 : vector<32x1xf32>
    %101 = arith.subf %96, %100 : vector<32x1xf32>
    %102 = math.exp %101 : vector<32x1xf32>
    %103 = arith.subf %97, %100 : vector<32x1xf32>
    %104 = math.exp %103 : vector<32x1xf32>
    %105 = arith.subf %98, %100 : vector<32x1xf32>
    %106 = math.exp %105 : vector<32x1xf32>
    %107 = arith.addf %102, %104 : vector<32x1xf32>
    %108 = arith.addf %107, %106 : vector<32x1xf32>
    %cst_64 = arith.constant 1.000000e+00 : f32
    %109 = vector.broadcast %cst_64 : f32 to vector<32x1xf32>
    %110 = arith.divf %109, %108 : vector<32x1xf32>
    %111 = arith.mulf %102, %110 : vector<32x1xf32>
    %112 = arith.mulf %104, %110 : vector<32x1xf32>
    %113 = arith.mulf %106, %110 : vector<32x1xf32>
    %114 = tpu.concatenate %111, %112, %113 in 0 : vector<32x1xf32>, vector<32x1xf32>, vector<32x1xf32> -> vector<96x1xf32>
    %c0_65 = arith.constant 0 : index
    %c0_66 = arith.constant 0 : index
    %115 = vector.load %arg13[%c0_65, %c0_66] : memref<96x512xf32, #tpu.memory_space<vmem>>, vector<96x256xf32>
    %116 = vector.broadcast %114 : vector<96x1xf32> to vector<96x256xf32>
    %117 = arith.mulf %115, %116 : vector<96x256xf32>
    %c0_67 = arith.constant 0 : index
    %c0_68 = arith.constant 0 : index
    %118 = vector.load %arg13[%c0_67, %c0_68] : memref<96x512xf32, #tpu.memory_space<vmem>>, vector<96x256xf32>
    tpu.vector_store %arg13[%c0_67, %c0_68], %117 {strides = array<i32>} : memref<96x512xf32, #tpu.memory_space<vmem>>, vector<96x256xf32>,
    %c0_69 = arith.constant 0 : index
    %c256 = arith.constant 256 : index
    %119 = vector.load %arg13[%c0_69, %c256] : memref<96x512xf32, #tpu.memory_space<vmem>>, vector<96x256xf32>
    %cst_70 = arith.constant dense<0.000000e+00> : vector<96xf32>
    %120 = vector.multi_reduction <add>, %119, %cst_70 [1] : vector<96x256xf32> to vector<96xf32>
    %121 = vector.shape_cast %120 : vector<96xf32> to vector<96x1xf32>
    %122 = vector.extract_strided_slice %121 {offsets = [0, 0], sizes = [32, 1], strides = [1, 1]} : vector<96x1xf32> to vector<32x1xf32>
    %123 = vector.extract_strided_slice %121 {offsets = [32, 0], sizes = [32, 1], strides = [1, 1]} : vector<96x1xf32> to vector<32x1xf32>
    %124 = arith.addf %122, %123 : vector<32x1xf32>
    %125 = vector.extract_strided_slice %121 {offsets = [64, 0], sizes = [32, 1], strides = [1, 1]} : vector<96x1xf32> to vector<32x1xf32>
    %126 = arith.addf %124, %125 : vector<32x1xf32>
    %c0_71 = arith.constant 0 : index
    %c0_72 = arith.constant 0 : index
    %127 = vector.load %arg8[%c0_71, %c0_72] : memref<32x32xf32, #tpu.memory_space<vmem>>, vector<32x32xf32>
    %cst_73 = arith.constant dense<0.000000e+00> : vector<32x1xf32>
    %128 = tpu.matmul %127, %126, %cst_73 {dimension_numbers = #tpu.dot_dimension_numbers<[1], [0], [0], [1], [0, 0, 1, 1], [], []>} : vector<32x32xf32>, vector<32x1xf32>, vector<32x1xf32> -> vector<32x1xf32>
    %129 = arith.mulf %128, %128 : vector<32x1xf32>
    %130 = arith.mulf %128, %129 : vector<32x1xf32>
    %cst_74 = arith.constant 4.471500e-02 : f32
    %131 = vector.broadcast %cst_74 : f32 to vector<32x1xf32>
    %132 = arith.mulf %131, %130 : vector<32x1xf32>
    %133 = arith.addf %128, %132 : vector<32x1xf32>
    %cst_75 = arith.constant 0.797884583 : f32
    %134 = vector.broadcast %cst_75 : f32 to vector<32x1xf32>
    %135 = arith.mulf %134, %133 : vector<32x1xf32>
    %136 = math.tanh %135 : vector<32x1xf32>
    %cst_76 = arith.constant 1.000000e+00 : f32
    %137 = vector.broadcast %cst_76 : f32 to vector<32x1xf32>
    %138 = arith.addf %137, %136 : vector<32x1xf32>
    %cst_77 = arith.constant 5.000000e-01 : f32
    %139 = vector.broadcast %cst_77 : f32 to vector<32x1xf32>
    %140 = arith.mulf %139, %138 : vector<32x1xf32>
    %141 = arith.mulf %128, %140 : vector<32x1xf32>
    %c0_78 = arith.constant 0 : index
    %c0_79 = arith.constant 0 : index
    %142 = vector.load %arg9[%c0_78, %c0_79] : memref<96x32xf32, #tpu.memory_space<vmem>>, vector<96x32xf32>
    %cst_80 = arith.constant dense<0.000000e+00> : vector<96x1xf32>
    %143 = tpu.matmul %142, %141, %cst_80 {dimension_numbers = #tpu.dot_dimension_numbers<[1], [0], [0], [1], [0, 0, 1, 1], [], []>} : vector<96x32xf32>, vector<32x1xf32>, vector<96x1xf32> -> vector<96x1xf32>
    %144 = vector.extract_strided_slice %143 {offsets = [0, 0], sizes = [32, 1], strides = [1, 1]} : vector<96x1xf32> to vector<32x1xf32>
    %145 = vector.extract_strided_slice %143 {offsets = [32, 0], sizes = [32, 1], strides = [1, 1]} : vector<96x1xf32> to vector<32x1xf32>
    %146 = vector.extract_strided_slice %143 {offsets = [64, 0], sizes = [32, 1], strides = [1, 1]} : vector<96x1xf32> to vector<32x1xf32>
    %147 = arith.maximumf %144, %145 : vector<32x1xf32>
    %148 = arith.maximumf %147, %146 : vector<32x1xf32>
    %149 = arith.subf %144, %148 : vector<32x1xf32>
    %150 = math.exp %149 : vector<32x1xf32>
    %151 = arith.subf %145, %148 : vector<32x1xf32>
    %152 = math.exp %151 : vector<32x1xf32>
    %153 = arith.subf %146, %148 : vector<32x1xf32>
    %154 = math.exp %153 : vector<32x1xf32>
    %155 = arith.addf %150, %152 : vector<32x1xf32>
    %156 = arith.addf %155, %154 : vector<32x1xf32>
    %cst_81 = arith.constant 1.000000e+00 : f32
    %157 = vector.broadcast %cst_81 : f32 to vector<32x1xf32>
    %158 = arith.divf %157, %156 : vector<32x1xf32>
    %159 = arith.mulf %150, %158 : vector<32x1xf32>
    %160 = arith.mulf %152, %158 : vector<32x1xf32>
    %161 = arith.mulf %154, %158 : vector<32x1xf32>
    %162 = tpu.concatenate %159, %160, %161 in 0 : vector<32x1xf32>, vector<32x1xf32>, vector<32x1xf32> -> vector<96x1xf32>
    %c0_82 = arith.constant 0 : index
    %c256_83 = arith.constant 256 : index
    %163 = vector.load %arg13[%c0_82, %c256_83] : memref<96x512xf32, #tpu.memory_space<vmem>>, vector<96x256xf32>
    %164 = vector.broadcast %162 : vector<96x1xf32> to vector<96x256xf32>
    %165 = arith.mulf %163, %164 : vector<96x256xf32>
    %c0_84 = arith.constant 0 : index
    %c256_85 = arith.constant 256 : index
    %166 = vector.load %arg13[%c0_84, %c256_85] : memref<96x512xf32, #tpu.memory_space<vmem>>, vector<96x256xf32>
    tpu.vector_store %arg13[%c0_84, %c256_85], %165 {strides = array<i32>} : memref<96x512xf32, #tpu.memory_space<vmem>>, vector<96x256xf32>,
    %c0_86 = arith.constant 0 : index
    %c0_87 = arith.constant 0 : index
    %167 = vector.load %arg10[%c0_86, %c0_87] : memref<32x96xbf16, #tpu.memory_space<vmem>>, vector<32x96xbf16>
    %c0_88 = arith.constant 0 : index
    %c0_89 = arith.constant 0 : index
    %168 = vector.load %arg13[%c0_88, %c0_89] : memref<96x512xf32, #tpu.memory_space<vmem>>, vector<96x512xf32>
    %169 = arith.truncf %168 : vector<96x512xf32> to vector<96x512xbf16>
    %cst_90 = arith.constant dense<0.000000e+00> : vector<32x512xf32>
    %170 = tpu.matmul %167, %169, %cst_90 {dimension_numbers = #tpu.dot_dimension_numbers<[1], [0], [0], [1], [0, 0, 1, 1], [], []>} : vector<32x96xbf16>, vector<96x512xbf16>, vector<32x512xf32> -> vector<32x512xf32>
    %c0_91 = arith.constant 0 : index
    %c0_92 = arith.constant 0 : index
    %171 = vector.load %arg11[%c0_91, %c0_92] : memref<32x1xf32, #tpu.memory_space<vmem>>, vector<32x1xf32>
    %172 = vector.broadcast %171 : vector<32x1xf32> to vector<32x512xf32>
    %173 = arith.addf %170, %172 : vector<32x512xf32>
    %174 = vector.extract_strided_slice %173 {offsets = [0, 0], sizes = [32, 256], strides = [1, 1]} : vector<32x512xf32> to vector<32x256xf32>
    %c0_93 = arith.constant 0 : index
    %c0_94 = arith.constant 0 : index
    %c0_95 = arith.constant 0 : index
    %175 = vector.load %arg12[%c0_93, %c0_94, %c0_95] : memref<2x32x256xf32, #tpu.memory_space<vmem>>, vector<1x32x256xf32>
    %176 = vector.shape_cast %175 : vector<1x32x256xf32> to vector<32x256xf32>
    %177 = vector.shape_cast %174 : vector<32x256xf32> to vector<1x32x256xf32>
    tpu.vector_store %arg12[%c0_93, %c0_94, %c0_95], %177 {strides = array<i32>} : memref<2x32x256xf32, #tpu.memory_space<vmem>>, vector<1x32x256xf32>,
    %178 = vector.extract_strided_slice %173 {offsets = [0, 256], sizes = [32, 256], strides = [1, 1]} : vector<32x512xf32> to vector<32x256xf32>
    %c1_96 = arith.constant 1 : index
    %c0_97 = arith.constant 0 : index
    %c0_98 = arith.constant 0 : index
    %179 = vector.load %arg12[%c1_96, %c0_97, %c0_98] : memref<2x32x256xf32, #tpu.memory_space<vmem>>, vector<1x32x256xf32>
    %180 = vector.shape_cast %179 : vector<1x32x256xf32> to vector<32x256xf32>
    %181 = vector.shape_cast %178 : vector<32x256xf32> to vector<1x32x256xf32>
    tpu.vector_store %arg12[%c1_96, %c0_97, %c0_98], %181 {strides = array<i32>} : memref<2x32x256xf32, #tpu.memory_space<vmem>>, vector<1x32x256xf32>,
    return
  }
  func.func @transform_0(%arg0: i32) -> (i32, i32, i32) {
    %c0_i32 = arith.constant 0 : i32
    %c0_i32_0 = arith.constant 0 : i32
    %c0_i32_1 = arith.constant 0 : i32
    return %arg0, %c0_i32, %c0_i32_0 : i32, i32, i32
  }
  func.func @transform_1(%arg0: i32) -> (i32, i32) {
    %c0_i32 = arith.constant 0 : i32
    %c0_i32_0 = arith.constant 0 : i32
    %c0_i32_1 = arith.constant 0 : i32
    return %c0_i32, %c0_i32_0 : i32, i32
  }
  func.func @transform_2(%arg0: i32) -> (i32, i32) {
    %c0_i32 = arith.constant 0 : i32
    %c0_i32_0 = arith.constant 0 : i32
    %c0_i32_1 = arith.constant 0 : i32
    return %c0_i32, %c0_i32_0 : i32, i32
  }
  func.func @transform_3(%arg0: i32) -> (i32, i32) {
    %c0_i32 = arith.constant 0 : i32
    %c0_i32_0 = arith.constant 0 : i32
    %c0_i32_1 = arith.constant 0 : i32
    return %c0_i32, %c0_i32_0 : i32, i32
  }
  func.func @transform_4(%arg0: i32) -> (i32, i32) {
    %c0_i32 = arith.constant 0 : i32
    %c0_i32_0 = arith.constant 0 : i32
    %c0_i32_1 = arith.constant 0 : i32
    return %c0_i32, %c0_i32_0 : i32, i32
  }
  func.func @transform_5(%arg0: i32) -> (i32, i32) {
    %c0_i32 = arith.constant 0 : i32
    %c0_i32_0 = arith.constant 0 : i32
    %c0_i32_1 = arith.constant 0 : i32
    return %c0_i32, %c0_i32_0 : i32, i32
  }
  func.func @transform_6(%arg0: i32) -> (i32, i32) {
    %c0_i32 = arith.constant 0 : i32
    %c0_i32_0 = arith.constant 0 : i32
    %c0_i32_1 = arith.constant 0 : i32
    return %c0_i32, %c0_i32_0 : i32, i32
  }
  func.func @transform_7(%arg0: i32) -> (i32, i32) {
    %c0_i32 = arith.constant 0 : i32
    %c0_i32_0 = arith.constant 0 : i32
    %c0_i32_1 = arith.constant 0 : i32
    return %c0_i32, %c0_i32_0 : i32, i32
  }
  func.func @transform_8(%arg0: i32) -> (i32, i32) {
    %c0_i32 = arith.constant 0 : i32
    %c0_i32_0 = arith.constant 0 : i32
    %c0_i32_1 = arith.constant 0 : i32
    return %c0_i32, %c0_i32_0 : i32, i32
  }
  func.func @transform_9(%arg0: i32) -> (i32, i32) {
    %c0_i32 = arith.constant 0 : i32
    %c0_i32_0 = arith.constant 0 : i32
    %c0_i32_1 = arith.constant 0 : i32
    return %c0_i32, %c0_i32_0 : i32, i32
  }
  func.func @transform_10(%arg0: i32) -> (i32, i32) {
    %c0_i32 = arith.constant 0 : i32
    %c0_i32_0 = arith.constant 0 : i32
    %c0_i32_1 = arith.constant 0 : i32
    return %c0_i32, %c0_i32_0 : i32, i32
  }
  func.func @transform_11(%arg0: i32) -> (i32, i32, i32) {
    %c0_i32 = arith.constant 0 : i32
    %c0_i32_0 = arith.constant 0 : i32
    %c0_i32_1 = arith.constant 0 : i32
    return %arg0, %c0_i32, %c0_i32_0 : i32, i32, i32
  }
}

</mosaic_0001>

<bundles_post_ra>
// kernel: s2_attention_pallas.1
= control target key start
LH: loop header
LB: loop body
LE: loop exit
PB: predicated region body
PF: predicated region fallthrough
CT: control target
= control target key end

     0   :  { %s2959_s17 = smov 0   ;;  %s3959_s0 = inlined_call_operand.vmem [shape: bf16[4,32,256], index: 0, kind: input, shape index: {}]   ;;  %s3960_s1 = inlined_call_operand.vmem [shape: f32[1,512], index: 1, kind: input, shape index: {}]   ;;  %s3961_s2 = inlined_call_operand.vmem [shape: f32[1,512], index: 2, kind: input, shape index: {}]   ;;  %s3962_s3 = inlined_call_operand.vmem [shape: f32[1,512], index: 3, kind: input, shape index: {}]   ;;  %s3963_s4 = inlined_call_operand.vmem [shape: f32[1,512], index: 4, kind: input, shape index: {}]   ;;  %s3964_s5 = inlined_call_operand.vmem [shape: bf16[96,32], index: 5, kind: input, shape index: {}]   ;;  %s3965_s6 = inlined_call_operand.vmem [shape: f32[96,1], index: 6, kind: input, shape index: {}]   ;;  %s3966_s7 = inlined_call_operand.vmem [shape: f32[32,32], index: 7, kind: input, shape index: {}]   ;;  %s3967_s8 = inlined_call_operand.vmem [shape: f32[96,32], index: 8, kind: input, shape index: {}]   ;;  %s3968_s9 = inlined_call_operand.vmem [shape: bf16[32,96], index: 9, kind: input, shape index: {}]   ;;  %s3969_s10 = inlined_call_operand.vmem [shape: f32[32,1], index: 10, kind: input, shape index: {}]   ;;  %s3970_s11 = inlined_call_operand.vmem [shape: f32[4,32,256], index: 11, kind: output, shape index: {}]  }
   0x1 LB: > { %s2516_s18 = sadd.s32 4294967295, %s2892_s17   ;;  %p2520_p0 = scmp.ge.s32.totalorder %s2892_s17, 1  ;;  %s2892_s17 = sphi %s2959_s17, %s21_s17  }
   0x2   : > { %p339_p1 = scmp.lt.s32.totalorder %s2892_s17, 3 }
   0x4   : > { %p340_p2 = pnand %p2520_p0, %p339_p1 }
   0x6   : > { %343 = sbr.rel (%p340_p2) target bundleno = 1496 (0x5d8), region = 64 }
   0xd   : > { %s2521_s19 = sshll.u32 %s2516_s18, 1  ;;  %v3981_v0 = vmov 0   ;;  %v457_v1 = vld [vmem:[%s3965_s6] sm:$0xff]  ;;  %v458_v8 = vld [vmem:[%s3965_s6 + $0x8] sm:$0xff]  ;;  %vm3990_vm0 = vcmask 261120   ;;  %v459_v14 = vld [vmem:[%s3965_s6 + $0x10] sm:$0xff] }
   0xe   : > { %p382_p3 = scmp.lt.s32.totalorder %s2521_s19, 3  ;;  %610 = vmatprep.mubr.bf16.mxu0 %v3981_v0  ;;  %660 = vmatprep.mubr.bf16.mxu1 %v3981_v0  ;;  %v461_v2 = vld [vmem:[%s3965_s6 + $0x20] sm:$0xff]  ;;  %v462_v9 = vld [vmem:[%s3965_s6 + $0x28] sm:$0xff]  ;;  %v460_v15 = vld [vmem:[%s3965_s6 + $0x18] sm:$0xff]  ;;  %s2895_s27 = smov 16  }
   0xf   : > { %2784 = vset.pattern.permute.xlu0 %v3981_v0  ;;  %2785 = vset.pattern.permute.xlu1 %v3981_v0  ;;  %v2792_v10 = vld [vmem:[%s3964_s5] sm:$0xff]   ;;  %v2793_v11 = vld [vmem:[%s3964_s5 + $0x28] sm:$0xff]   ;;  %v463_v18 = vld [vmem:[%s3965_s6 + $0x30] sm:$0xff]  ;;  %s2896_s28 = smov 112   ;;  %s2897_s29 = smov 1  }
  0x10   : > { %s4135_s19 = smov (!%p382_p3, %s2521_s19), 3  ;;  %471 = vperm.xlu0 %2784, %v457_v1   ;;  %491 = vperm.xlu1 %2785, %v461_v2   ;;  %v2800_v17 = vld [vmem:[%s3964_s5 + $0x8] sm:$0xff]   ;;  %v464_v19 = vld [vmem:[%s3965_s6 + $0x38] sm:$0xff]  ;;  %v465_v20 = vld [vmem:[%s3965_s6 + $0x40] sm:$0xff] }
  0x11   : > { %s2605_s20 = sshll.u32 %s4135_s19, 5  ;;  %v466_v21 = vld [vmem:[%s3965_s6 + $0x48] sm:$0xff]  ;;  %v2801_v22 = vld [vmem:[%s3964_s5 + $0x10] sm:$0xff]   ;;  %v468_v24 = vld [vmem:[%s3965_s6 + $0x58] sm:$0xff]  ;;  %s2606_s12 = sshll.u32 %s4135_s19, 6 }
  0x12   : > { %s2977_s23 = scalar_lea.vmem %s3959_s0, %s2605_s20  ;;  %v467_v23 = vld [vmem:[%s3965_s6 + $0x50] sm:$0xff]  ;;  %v2802_v25 = vld [vmem:[%s3964_s5 + $0x18] sm:$0xff]   ;;  %v2803_v26 = vld [vmem:[%s3964_s5 + $0x20] sm:$0xff]   ;;  %s3938_s15 = scalar_lea.vmem %s3970_s11, %s2606_s12 }
  0x13   : > { %v2786_v3 = vld [vmem:[%s2977_s23 + $0x4] ss:$8 sps:$4 sm:$0xff]   ;;  %v2788_v4 = vld [vmem:[%s2977_s23] ss:$8 sps:$4 sm:$0xff]   ;;  %v2789_v5 = vld [vmem:[%s2977_s23 + $0x14] ss:$8 sps:$4 sm:$0xff]  }
  0x14   : > { %578 = vmatprep.subr.bf16.mxu0 %v2786_v3  ;;  %2767 = vmatprep.subr.bf16.mxu1 %v2786_v3  ;;  %v2791_v6 = vld [vmem:[%s2977_s23 + $0x10] ss:$8 sps:$4 sm:$0xff]   ;;  %v2796_v7 = vld [vmem:[%s2977_s23 + $0x24] ss:$8 sps:$4 sm:$0xff]   ;;  %v2794_v12 = vld [vmem:[%s2977_s23 + $0x20] ss:$8 sps:$4 sm:$0xff]  }
  0x15   : > { %579 = vmatpush1.bf16.msra.mxu0 %v2788_v4  ;;  %2769 = vmatpush1.bf16.msra.mxu1 %v2788_v4  ;;  %v2799_v13 = vld [vmem:[%s2977_s23 + $0x34] ss:$8 sps:$4 sm:$0xff]   ;;  %v2797_v16 = vld [vmem:[%s2977_s23 + $0x30] ss:$8 sps:$4 sm:$0xff]   ;;  %s2898_s23 = smov 127  }
  0x16   : > { %580 = vmatprep.subr.bf16.mxu0 %v2789_v5  ;;  %2768 = vmatprep.subr.bf16.mxu1 %v2789_v5 }
  0x17   : > { %476 = vperm.xlu0 %2784, %v458_v8   ;;  %496 = vperm.xlu1 %2785, %v462_v9  }
  0x19   : > { %581 = vmatpush1.bf16.msra.mxu0 %v2791_v6  ;;  %2770 = vmatpush1.bf16.msra.mxu1 %v2791_v6 }
  0x1a   : > { %671 = vmatprep.subr.bf16.mxu1 %v2796_v7 }
  0x1b   : > { %481 = vperm.xlu0 %2784, %v459_v14   ;;  %486 = vperm.xlu1 %2785, %v460_v15  }
  0x1c   : > { %2545 = vmatmul.mubr.msk.bf16.vlgmr.msra.gmra.mrb[0].mxu0 %vm3990_vm0, %v2792_v10  ;;  %2550 = vmatmul.mubr.msk.bf16.vlgmr.msra.gmra.mrb[0].mxu1 %vm3990_vm0, %v2793_v11 }
  0x1d   : > { %672 = vmatpush1.bf16.msra.mxu1 %v2794_v12  ;;  %620 = vmatprep.mubr.bf16.mxu0 %v3981_v0 }
  0x1e   : > { %673 = vmatprep.subr.bf16.mxu1 %v2799_v13  ;;  %703 = vmatprep.mubr.bf16.mxu1 %v3981_v0 }
  0x1f   : > { %501 = vperm.xlu0 %2784, %v463_v18   ;;  %506 = vperm.xlu1 %2785, %v464_v19  }
  0x21   : > { %674 = vmatpush1.bf16.msra.mxu1 %v2797_v16 }
  0x23   : > { %511 = vperm.xlu0 %2784, %v465_v20   ;;  %516 = vperm.xlu1 %2785, %v466_v21  }
  0x24   : > { %2546 = vmatmul.mubr.msk.bf16.gmra.mrb[4].mxu0 %vm3990_vm0, %v2800_v17  ;;  %2551 = vmatmul.mubr.msk.bf16.vlgmr.msra.gmra.mrb[4].mxu1 %vm3990_vm0, %v2792_v10 }
  0x25   : > { %630 = vmatprep.mubr.bf16.mxu0 %v3981_v0  ;;  %713 = vmatprep.mubr.bf16.mxu1 %v3981_v0 }
  0x27   : > { %521 = vperm.xlu0 %2784, %v467_v23   ;;  %526 = vperm.xlu1 %2785, %v468_v24  }
  0x2c   : > { %2547 = vmatmul.mubr.msk.bf16.gmra.mrb[8].mxu0 %vm3990_vm0, %v2801_v22  ;;  %2552 = vmatmul.mubr.msk.bf16.gmra.mrb[8].mxu1 %vm3990_vm0, %v2800_v17 }
  0x2d   : > { %640 = vmatprep.mubr.bf16.mxu0 %v3981_v0  ;;  %723 = vmatprep.mubr.bf16.mxu1 %v3981_v0 }
  0x34   : > { %2548 = vmatmul.mubr.msk.bf16.gmra.mrb[12].mxu0 %vm3990_vm0, %v2802_v25  ;;  %2553 = vmatmul.mubr.msk.bf16.gmra.mrb[12].mxu1 %vm3990_vm0, %v2801_v22 }
  0x35   : > { %650 = vmatprep.mubr.bf16.mxu0 %v3981_v0  ;;  %733 = vmatprep.mubr.bf16.mxu1 %v3981_v0 }
  0x3c   : > { %2549 = vmatmul.mubr.msk.bf16.gmra.mrb[16].mxu0 %vm3990_vm0, %v2803_v26  ;;  %2554 = vmatmul.mubr.msk.bf16.gmra.mrb[16].mxu1 %vm3990_vm0, %v2802_v25 }
  0x3d   : > { %743 = vmatprep.mubr.bf16.mxu1 %v3981_v0 }
  0x44   : > { %2555 = vmatmul.mubr.msk.bf16.gmra.mrb[20].mxu1 %vm3990_vm0, %v2803_v26 }
  0x45   : > { %753 = vmatprep.mubr.bf16.mxu1 %v3981_v0 }
  0x4c   : > { %2556 = vmatmul.mubr.msk.bf16.gmra.mrb[24].mxu1 %vm3990_vm0, %v2793_v11 }
  0x8f   : > { %v472_v27 = vpop.permute.xlu0 %471  ;;  %v3063_v28 = vpop.permute.xlu1 %491 }
  0x96   : > { %v477_v29 = vpop.permute.xlu0 %476  ;;  %v3085_v42 = vpop.permute.xlu1 %496 }
  0x9a   : > { %v482_v43 = vpop.permute.xlu0 %481  ;;  %v3103_v56 = vpop.permute.xlu1 %486 }
  0xef   : > { %v612_v30 = vpop.f32.mrb[0].mxu0  ;;  %v3065_v31 = vpop.f32.mrb[0].mxu1 }
  0xf0   : > { %v3067_v32 = vadd.f32 %v612_v30, %v472_v27  ;;  %v614_v33 = vpop.f32.mrb[1].mxu0  ;;  %v3069_v34 = vpop.f32.mrb[1].mxu1 }
  0xf1   : > { %v3071_v35 = vadd.f32 %v614_v33, %v472_v27  ;;  %v616_v36 = vpop.f32.mrb[2].mxu0  ;;  %v3073_v37 = vpop.f32.mrb[2].mxu1 }
  0xf2   : > { %v618_v38 = vpop.f32.mrb[3].mxu0  ;;  %824 = vrot.lane.b32.xlu0 %v3067_v32, %s2895_s27  ;;  %v3077_v39 = vpop.f32.mrb[3].mxu1  ;;  %v3083_v41 = vadd.f32 %v616_v36, %v477_v29 }
  0xf3   : > { %v3079_v40 = vadd.f32 %v618_v38, %v477_v29  ;;  %826 = vrot.lane.b32.xlu1 %v3071_v35, %s2895_s27 }
  0xf6   : > { %874 = vrot.lane.b32.xlu0 %v3079_v40, %s2896_s28 }
  0xf7   : > { %v622_v44 = vpop.f32.mrb[4].mxu0  ;;  %v705_v45 = vpop.f32.mrb[4].mxu1  ;;  %872 = vrot.lane.b32.xlu1 %v3083_v41, %s2896_s28 }
  0xf8   : > { %v3091_v46 = vadd.f32 %v622_v44, %v482_v43  ;;  %v624_v47 = vpop.f32.mrb[5].mxu0  ;;  %v707_v48 = vpop.f32.mrb[5].mxu1  ;;  %v3099_v54 = vadd.f32 %v705_v45, %v472_v27 }
  0xf9   : > { %v3093_v49 = vadd.f32 %v624_v47, %v482_v43  ;;  %v626_v50 = vpop.f32.mrb[6].mxu0  ;;  %v709_v51 = vpop.f32.mrb[6].mxu1  ;;  %v3109_v59 = vadd.f32 %v707_v48, %v472_v27 }
  0xfa   : > { %v628_v52 = vpop.f32.mrb[7].mxu0  ;;  %v711_v53 = vpop.f32.mrb[7].mxu1  ;;  %918 = vrot.lane.b32.xlu0 %v3091_v46, %s2897_s29  ;;  %v3101_v55 = vadd.f32 %v709_v51, %v477_v29  ;;  %v3112_v62 = vadd.f32 %v626_v50, %v3103_v56 }
  0xfb   : > { %920 = vrot.lane.b32.xlu1 %v3093_v49, %s2897_s29  ;;  %v3121_v4 = vadd.f32 %v628_v52, %v3103_v56  ;;  %v3123_v5 = vadd.f32 %v711_v53, %v477_v29  ;;  %v502_v29 = vpop.permute.xlu0 %501  ;;  %v507_v48 = vpop.permute.xlu1 %506 }
  0xfe   : > { %828 = vrot.lane.b32.xlu0 %v3099_v54, %s2895_s27 }
  0xff   : > { %v632_v57 = vpop.f32.mrb[8].mxu0  ;;  %v715_v58 = vpop.f32.mrb[8].mxu1  ;;  %876 = vrot.lane.b32.xlu1 %v3101_v55, %s2896_s28 }
 0x100   : > { %v634_v60 = vpop.f32.mrb[9].mxu0  ;;  %v717_v61 = vpop.f32.mrb[9].mxu1  ;;  %v3130_v8 = vadd.f32 %v632_v57, %v3063_v28  ;;  %v3139_v16 = vadd.f32 %v715_v58, %v482_v43 }
 0x101   : > { %v636_v63 = vpop.f32.mrb[10].mxu0  ;;  %v719_v1 = vpop.f32.mrb[10].mxu1  ;;  %v3133_v11 = vadd.f32 %v634_v60, %v3063_v28  ;;  %v3150_v20 = vadd.f32 %v717_v61, %v482_v43 }
 0x102   : > { %v638_v2 = vpop.f32.mrb[11].mxu0  ;;  %v3114_v3 = vpop.f32.mrb[11].mxu1  ;;  %830 = vrot.lane.b32.xlu0 %v3109_v59, %s2895_s27  ;;  %v3142_v17 = vadd.f32 %v636_v63, %v3085_v42  ;;  %v3155_v23 = vadd.f32 %v719_v1, %v3103_v56 }
 0x103   : > { %964 = vrot.lane.b32.xlu1 %v3112_v62, %s2898_s23  ;;  %v3162_v30 = vadd.f32 %v638_v2, %v3085_v42 }
 0x106   : > { %966 = vrot.lane.b32.xlu0 %v3121_v4, %s2898_s23 }
 0x107   : > { %v642_v6 = vpop.f32.mrb[12].mxu0  ;;  %v725_v7 = vpop.f32.mrb[12].mxu1  ;;  %878 = vrot.lane.b32.xlu1 %v3123_v5, %s2896_s28 }
 0x108   : > { %v644_v9 = vpop.f32.mrb[13].mxu0  ;;  %v727_v10 = vpop.f32.mrb[13].mxu1  ;;  %v3170_v38 = vadd.f32 %v642_v6, %v502_v29  ;;  %v3180_v50 = vadd.f32 %v725_v7, %v3063_v28 }
 0x109   : > { %v646_v12 = vpop.f32.mrb[14].mxu0  ;;  %v729_v13 = vpop.f32.mrb[14].mxu1  ;;  %v3164_v33 = vadd.f32 %v644_v9, %v502_v29  ;;  %v3191_v53 = vadd.f32 %v727_v10, %v3063_v28 }
 0x10a   : > { %v648_v14 = vpop.f32.mrb[15].mxu0  ;;  %v731_v15 = vpop.f32.mrb[15].mxu1  ;;  %1010 = vrot.lane.b32.xlu0 %v3130_v8, %s2897_s29  ;;  %v3173_v44 = vadd.f32 %v729_v13, %v3085_v42  ;;  %v3182_v51 = vadd.f32 %v646_v12, %v507_v48 }
 0x10b   : > { %1012 = vrot.lane.b32.xlu1 %v3133_v11, %s2897_s29  ;;  %v3196_v58 = vadd.f32 %v731_v15, %v3085_v42  ;;  %v3206_v63 = vadd.f32 %v648_v14, %v507_v48  ;;  %v3218_v42 = vadd.f32 %v3114_v3, %v3103_v56  ;;  %v517_v7 = vpop.permute.xlu1 %516  ;;  %v512_v9 = vpop.permute.xlu0 %511 }
 0x10e   : > { %922 = vrot.lane.b32.xlu0 %v3139_v16, %s2897_s29 }
 0x10f   : > { %v3146_v18 = vpop.f32.mrb[16].mxu0  ;;  %v735_v19 = vpop.f32.mrb[16].mxu1  ;;  %1034 = vrot.lane.b32.xlu1 %v3142_v17, %s2898_s23 }
 0x110   : > { %v3152_v21 = vpop.f32.mrb[17].mxu0  ;;  %v737_v22 = vpop.f32.mrb[17].mxu1  ;;  %v3224_v2 = vadd.f32 %v735_v19, %v502_v29 }
 0x111   : > { %v656_v24 = vpop.f32.mrb[18].mxu0  ;;  %v739_v25 = vpop.f32.mrb[18].mxu1  ;;  %v3214_v28 = vadd.f32 %v737_v22, %v502_v29 }
 0x112   : > { %v658_v26 = vpop.f32.mrb[19].mxu0  ;;  %v741_v27 = vpop.f32.mrb[19].mxu1  ;;  %924 = vrot.lane.b32.xlu0 %v3150_v20, %s2897_s29  ;;  %v3208_v1 = vadd.f32 %v739_v25, %v507_v48  ;;  %v3244_v13 = vadd.f32 %v656_v24, %v517_v7  ;;  %v3265_v25 = vadd.f32 %v3146_v18, %v512_v9 }
 0x113   : > { %968 = vrot.lane.b32.xlu1 %v3155_v23, %s2898_s23  ;;  %v3226_v6 = vadd.f32 %v741_v27, %v507_v48  ;;  %v3232_v56 = vpop.permute.xlu1 %526  ;;  %v3242_v12 = vpop.permute.xlu0 %521  ;;  %v3246_v14 = vadd.f32 %v658_v26, %v517_v7  ;;  %v3268_v26 = vadd.f32 %v3152_v21, %v512_v9 }
 0x114   : > { %4007 = vst [vmem:[#allocation6_spill] sm:$0xff] %v3232_v56  ;;  %v3236_v3 = vadd.f32 %v3077_v39, %v3232_v56  ;;  %v3240_v10 = vadd.f32 %v3073_v37, %v3232_v56  ;;  %4010 = vst [vmem:[#allocation9_spill] sm:$0xff] %v3244_v13  ;;  %v3252_v19 = vadd.f32 %v3065_v31, %v3242_v12 }
 0x115   : > { %4006 = vst [vmem:[#allocation5_spill] sm:$0xff] %v3226_v6  ;;  %4011 = vst [vmem:[#allocation10_spill] sm:$0xff] %v3246_v14  ;;  %v3256_v39 = vadd.f32 %v3069_v34, %v3242_v12  ;;  %v1153_v24 = vadd.f32 %v3246_v14, %v3244_v13  ;;  %v1150_v18 = vadd.f32 %v3268_v26, %v3265_v25 }
 0x116   : > { %1036 = vrot.lane.b32.xlu0 %v3162_v30, %s2898_s23  ;;  %4008 = vst [vmem:[#allocation7_spill] sm:$0xff] %v3236_v3  ;;  %4009 = vst [vmem:[#allocation8_spill] sm:$0xff] %v3240_v10  ;;  %v1159_v15 = vadd.f32 %v3236_v3, %v3240_v10 }
 0x117   : > { %v745_v36 = vpop.f32.mrb[20].mxu1  ;;  %1060 = vrot.lane.b32.xlu1 %v3164_v33, %s2895_s27  ;;  %4012 = vst [vmem:[#allocation11_spill] sm:$0xff] %v3252_v19  ;;  %4013 = vst [vmem:[#allocation12_spill] sm:$0xff] %v3256_v39  ;;  %v1156_v31 = vadd.f32 %v3256_v39, %v3252_v19 }
 0x118   : > { %v747_v43 = vpop.f32.mrb[21].mxu1  ;;  %4016 = vst [vmem:[#allocation15_spill] sm:$0xff] %v3265_v25  ;;  %4017 = vst [vmem:[#allocation16_spill] sm:$0xff] %v3268_v26  ;;  %v3274_v27 = vadd.f32 %v745_v36, %v512_v9 }
 0x119   : > { %v749_v45 = vpop.f32.mrb[22].mxu1  ;;  %v3276_v29 = vadd.f32 %v747_v43, %v512_v9  ;;  %v814_v9 = vld [vmem:[%s3961_s2] sm:$0xf] }
 0x11a   : > { %v751_v47 = vpop.f32.mrb[23].mxu1  ;;  %1058 = vrot.lane.b32.xlu0 %v3170_v38, %s2895_s27  ;;  %v3258_v37 = vadd.f32 %v749_v45, %v517_v7  ;;  %4018 = vst [vmem:[#allocation17_spill] sm:$0xff] %v3274_v27  ;;  %v832_v45 = vlaneseq  ;;  %vm815_vm2 = vcmp.gt.f32.partialorder %v814_v9, 0.5 }
 0x11b   : > { %1038 = vrot.lane.b32.xlu1 %v3173_v44, %s2898_s23  ;;  %v3260_v22 = vadd.f32 %v751_v47, %v517_v7  ;;  %4019 = vst [vmem:[#allocation18_spill] sm:$0xff] %v3276_v29  ;;  %v1708_v21 = vadd.f32 %v3276_v29, %v3274_v27  ;;  %v812_v7 = vld [vmem:[%s3960_s1] sm:$0xf]  ;;  %v885_v29 = vsel %vm815_vm2, 1, %v3981_v0 }
 0x11c   : > { %4014 = vst [vmem:[#allocation13_spill] sm:$0xff] %v3258_v37  ;;  %v841_v36 = vshrl.u32 %v832_v45, 7  ;;  %vm813_vm1 = vcmp.gt.f32.partialorder %v812_v7, 0.5 }
 0x11d   : > { %4015 = vst [vmem:[#allocation14_spill] sm:$0xff] %v3260_v22  ;;  %v1711_v34 = vadd.f32 %v3260_v22, %v3258_v37 }
 0x11e   : > { %1014 = vrot.lane.b32.xlu0 %v3180_v50, %s2897_s29  ;;  %v3301_v7 = vsub.s32 0, %v841_v36 }
 0x11f   : > { %v3186_v52 = vpop.f32.mrb[24].mxu1  ;;  %1082 = vrot.lane.b32.xlu1 %v3182_v51, %s2896_s28 }
 0x120   : > { %v3193_v57 = vpop.f32.mrb[25].mxu1  ;;  %v889_v25 = vrot.slane %v885_v29, %v3301_v7 }
 0x121   : > { %v3198_v60 = vpop.f32.mrb[26].mxu1 }
 0x122   : > { %4004 = vst [vmem:[#allocation3_spill] sm:$0xff] %v3198_v60  ;;  %v3200_v61 = vpop.f32.mrb[27].mxu1  ;;  %1016 = vrot.lane.b32.xlu0 %v3191_v53, %s2897_s29  ;;  %vm3375_vm10 = vcmp.eq.s32.totalorder %v889_v25, 1 }
 0x123   : > { %4005 = vst [vmem:[#allocation4_spill] sm:$0xff] %v3200_v61  ;;  %1040 = vrot.lane.b32.xlu1 %v3196_v58, %s2898_s23 }
 0x126   : > { %1084 = vrot.lane.b32.xlu0 %v3206_v63, %s2896_s28 }
 0x127   : > { %1086 = vrot.lane.b32.xlu1 %v3208_v1, %s2896_s28 }
 0x12a   : > { %1064 = vrot.lane.b32.xlu0 %v3214_v28, %s2895_s27 }
 0x12b   : > { %970 = vrot.lane.b32.xlu1 %v3218_v42, %s2898_s23 }
 0x12e   : > { %1062 = vrot.lane.b32.xlu0 %v3224_v2, %s2895_s27 }
 0x12f   : > { %1088 = vrot.lane.b32.xlu1 %v3226_v6, %s2896_s28 }
 0x14d   : > { %1160 = vadd.xlane.f32.xlu0 %v1159_v15 }
 0x151   : > { %1154 = vadd.xlane.f32.xlu0 %v1153_v24  ;;  %v3288_v24 = vsub.s32 1, %v841_v36 }
 0x153   : > { %1157 = vadd.xlane.f32.xlu1 %v1156_v31  ;;  %v3290_v31 = vsub.s32 2, %v841_v36  ;;  %v893_v9 = vrot.slane %v885_v29, %v3288_v24 }
 0x155   : > { %1712 = vadd.xlane.f32.xlu0 %v1711_v34  ;;  %v839_v34 = vsel %vm813_vm1, 1, %v3981_v0  ;;  %v897_v26 = vrot.slane %v885_v29, %v3290_v31  ;;  %vm3342_vm9 = vcmp.eq.s32.totalorder %v893_v9, 1 }
 0x156   : > { %v847_v10 = vrot.slane %v839_v34, %v3288_v24  ;;  %v851_v39 = vrot.slane %v839_v34, %v3290_v31  ;;  %v843_v37 = vrot.slane %v839_v34, %v3301_v7 }
 0x157   : > { %1151 = vadd.xlane.f32.xlu1 %v1150_v18  ;;  %v3293_v18 = vsub.s32 3, %v841_v36  ;;  %vm3387_vm11 = vcmp.eq.s32.totalorder %v897_v26, 1 }
 0x158   : > { %vm3310_vm4 = vcmp.eq.s32.totalorder %v847_v10, 1  ;;  %vm3314_vm5 = vcmp.eq.s32.totalorder %v851_v39, 1  ;;  %vm3323_vm6 = vcmp.eq.s32.totalorder %v843_v37, 1  ;;  %v4075_v10 = vld [vmem:[#allocation5_spill] sm:$0xff] }
 0x159   : > { %v855_v19 = vrot.slane %v839_v34, %v3293_v18  ;;  %v901_v61 = vrot.slane %v885_v29, %v3293_v18 }
 0x15b   : > { %1709 = vadd.xlane.f32.xlu1 %v1708_v21  ;;  %v3295_v21 = vand.u32 127, %v832_v45  ;;  %vm3327_vm7 = vcmp.eq.s32.totalorder %v855_v19, 1  ;;  %vm3391_vm12 = vcmp.eq.s32.totalorder %v901_v61, 1 }
 0x15d   : > { %vm4000_vm3 = vcmp.lt.s32.totalorder %v3295_v21, 16  ;;  %vm3998_vm8 = vcmp.lt.s32.totalorder %v3295_v21, 112  ;;  %vm926_vm15 = vcmp.lt.s32.totalorder %v3295_v21, 1  ;;  %vm4003_vm1 = vcmp.lt.s32.totalorder %v3295_v21, 127 }
 0x164   : > { %v825_v47 = vpop.permute.xlu0 %824 }
 0x165   : > { %v827_v48 = vpop.permute.xlu1 %826 }
 0x166   : > { %v837_v34 = vsel %vm4000_vm3, %v825_v47, %v827_v48 }
 0x167   : > { %v3354_v29 = vsel %vm3310_vm4, %v3071_v35, %v837_v34 }
 0x168   : > { %v875_v15 = vpop.permute.xlu0 %874  ;;  %4031 = vst [vmem:[#allocation20_spill] sm:$0xff] %v3354_v29 }
 0x169   : > { %v873_v43 = vpop.permute.xlu1 %872 }
 0x16a   : > { %v883_v9 = vsel %vm3998_vm8, %v873_v43, %v875_v15 }
 0x16c   : > { %v3297_v27 = vpop.permute.xlu0 %918 }
 0x16d   : > { %v3299_v3 = vpop.permute.xlu1 %920 }
 0x170   : > { %v829_v45 = vpop.permute.xlu0 %828 }
 0x171   : > { %v877_v22 = vpop.permute.xlu1 %876  ;;  %v836_v0 = vsel %vm4000_vm3, %v827_v48, %v829_v45 }
 0x172   : > { %v882_v60 = vsel %vm3998_vm8, %v875_v15, %v877_v22 }
 0x174   : > { %v831_v39 = vpop.permute.xlu0 %830 }
 0x175   : > { %v835_v37 = vsel %vm4000_vm3, %v829_v45, %v831_v39  ;;  %v838_v48 = vsel %vm4000_vm3, %v831_v39, %v825_v47  ;;  %v3340_v19 = vpop.permute.xlu1 %964  ;;  %v3359_v47 = vsel %vm3314_vm5, %v3099_v54, %v836_v0  ;;  %v818_v54 = vld [vmem:[%s3963_s4] sm:$0xf]  ;;  %v3385_v39 = vsel %vm3342_vm9, %v3079_v40, %v882_v60 }
 0x176   : > { %v3349_v6 = vsel %vm3323_vm6, %v3067_v32, %v838_v48  ;;  %4032 = vst [vmem:[#allocation21_spill] sm:$0xff] %v3359_v47  ;;  %v3364_v45 = vsel %vm3327_vm7, %v3109_v59, %v835_v37  ;;  %v816_v32 = vld [vmem:[%s3962_s3] sm:$0xf]  ;;  %4036 = vst [vmem:[#allocation23_spill] sm:$0xff] %v3385_v39  ;;  %v3402_v40 = vsel %vm3375_vm10, %v3083_v41, %v883_v9  ;;  %vm819_vm14 = vcmp.gt.f32.partialorder %v818_v54, 0.5 }
 0x177   : > { %4030 = vst [vmem:[#allocation19_spill] sm:$0xff] %v3349_v6  ;;  %4033 = vst [vmem:[#allocation22_spill] sm:$0xff] %v3364_v45  ;;  %v1126_v35 = vadd.f32 %v3354_v29, %v3349_v6  ;;  %v1684_v34 = vadd.f32 %v3364_v45, %v3359_v47  ;;  %vm817_vm13 = vcmp.gt.f32.partialorder %v816_v32, 0.5  ;;  %v1129_v60 = vadd.f32 %v3385_v39, %v3402_v40 }
 0x178   : > { %v967_v59 = vpop.permute.xlu0 %966  ;;  %4041 = vst [vmem:[#allocation24_spill] sm:$0xff] %v3402_v40  ;;  %v4044_v41 = vmov 0  }
 0x179   : > { %v879_v25 = vpop.permute.xlu1 %878  ;;  %1127 = vadd.xlane.f32.xlu0 %v1126_v35  ;;  %1685 = vadd.xlane.f32.xlu1 %v1684_v34  ;;  %v931_v32 = vsel %vm817_vm13, 1, %v4044_v41  ;;  %v977_v35 = vsel %vm819_vm14, 1, %v4044_v41 }
 0x17a   : > { %v881_v48 = vsel %vm3998_vm8, %v877_v22, %v879_v25  ;;  %v884_v45 = vsel %vm3998_vm8, %v879_v25, %v873_v43  ;;  %v935_v34 = vrot.slane %v931_v32, %v3301_v7 }
 0x17b   : > { %v3409_v61 = vsel %vm3387_vm11, %v3101_v55, %v881_v48  ;;  %v3414_v22 = vsel %vm3391_vm12, %v3123_v5, %v884_v45  ;;  %v939_v55 = vrot.slane %v931_v32, %v3288_v24  ;;  %v981_v5 = vrot.slane %v977_v35, %v3301_v7 }
 0x17c   : > { %4042 = vst [vmem:[#allocation25_spill] sm:$0xff] %v3409_v61  ;;  %4043 = vst [vmem:[#allocation26_spill] sm:$0xff] %v3414_v22  ;;  %v1011_v26 = vpop.permute.xlu0 %1010  ;;  %v1687_v43 = vadd.f32 %v3414_v22, %v3409_v61  ;;  %v985_v45 = vrot.slane %v977_v35, %v3288_v24  ;;  %v929_v48 = vsel %vm926_vm15, %v3297_v27, %v3299_v3  ;;  %vm3432_vm2 = vcmp.eq.s32.totalorder %v935_v34, 1 }
 0x17d   : > { %v1013_v9 = vpop.permute.xlu1 %1012  ;;  %1130 = vadd.xlane.f32.xlu1 %v1129_v60  ;;  %vm3436_vm13 = vcmp.eq.s32.totalorder %v939_v55, 1  ;;  %v975_v24 = vsel %vm4003_vm1, %v3340_v19, %v967_v59  ;;  %vm3443_vm14 = vcmp.eq.s32.totalorder %v981_v5, 1 }
 0x17e   : > { %1688 = vadd.xlane.f32.xlu0 %v1687_v43  ;;  %vm3447_vm0 = vcmp.eq.s32.totalorder %v985_v45, 1  ;;  %v3467_v45 = vsel %vm3436_vm13, %v3093_v49, %v929_v48 }
 0x17f   : > { %4054 = vst [vmem:[#allocation28_spill] sm:$0xff] %v3467_v45 }
 0x180   : > { %v3423_v54 = vpop.permute.xlu0 %922 }
 0x181   : > { %v1035_v25 = vpop.permute.xlu1 %1034 }
 0x184   : > { %v925_v7 = vpop.permute.xlu0 %924 }
 0x185   : > { %v930_v34 = vsel %vm926_vm15, %v925_v7, %v3297_v27  ;;  %v3454_v55 = vpop.permute.xlu1 %968  ;;  %v3474_v27 = vsel %vm3443_vm14, %v3112_v62, %v975_v24  ;;  %v947_v62 = vrot.slane %v931_v32, %v3293_v18 }
 0x186   : > { %v974_v61 = vsel %vm4003_vm1, %v967_v59, %v3454_v55  ;;  %v3462_v5 = vsel %vm3432_vm2, %v3091_v46, %v930_v34  ;;  %4055 = vst [vmem:[#allocation29_spill] sm:$0xff] %v3474_v27 }
 0x187   : > { %4053 = vst [vmem:[#allocation27_spill] sm:$0xff] %v3462_v5  ;;  %v1132_v29 = vadd.f32 %v3467_v45, %v3462_v5  ;;  %v3479_v59 = vsel %vm3447_vm0, %v3121_v4, %v974_v61  ;;  %v943_v5 = vrot.slane %v931_v32, %v3290_v31  ;;  %v1020_v4 = vsel %vm926_vm15, %v1011_v26, %v1013_v9 }
 0x188   : > { %4056 = vst [vmem:[#allocation30_spill] sm:$0xff] %v3479_v59  ;;  %v1037_v46 = vpop.permute.xlu0 %1036  ;;  %v1135_v34 = vadd.f32 %v3479_v59, %v3474_v27  ;;  %vm3495_vm3 = vcmp.eq.s32.totalorder %v947_v62, 1 }
 0x189   : > { %v1061_v6 = vpop.permute.xlu1 %1060  ;;  %1133 = vadd.xlane.f32.xlu1 %v1132_v29  ;;  %vm3491_vm8 = vcmp.eq.s32.totalorder %v943_v5, 1  ;;  %v993_v5 = vrot.slane %v977_v35, %v3293_v18  ;;  %v1044_v18 = vsel %vm4003_vm1, %v1035_v25, %v1037_v46 }
 0x18a   : > { %1136 = vadd.xlane.f32.xlu0 %v1135_v34  ;;  %v989_v34 = vrot.slane %v977_v35, %v3290_v31  ;;  %v3515_v31 = vsel %vm3436_vm13, %v3133_v11, %v1020_v4 }
 0x18b   : > { %vm3546_vm13 = vcmp.eq.s32.totalorder %v993_v5, 1 }
 0x18c   : > { %v1059_v49 = vpop.permute.xlu0 %1058 }
 0x18d   : > { %v1039_v48 = vpop.permute.xlu1 %1038 }
 0x18e   : > { %v1043_v32 = vsel %vm4003_vm1, %v1037_v46, %v1039_v48 }
 0x190   : > { %v1015_v45 = vpop.permute.xlu0 %1014 }
 0x191   : > { %v3485_v24 = vpop.permute.xlu1 %1082  ;;  %v1019_v61 = vsel %vm926_vm15, %v1013_v9, %v1015_v45 }
 0x194   : > { %v1017_v39 = vpop.permute.xlu0 %1016 }
 0x195   : > { %v1018_v27 = vsel %vm926_vm15, %v1015_v45, %v1017_v39  ;;  %v1021_v9 = vsel %vm926_vm15, %v1017_v39, %v1011_v26  ;;  %v1041_v40 = vpop.permute.xlu1 %1040  ;;  %v3520_v45 = vsel %vm3491_vm8, %v3180_v50, %v1019_v61  ;;  %v3536_v50 = vsel %vm3447_vm0, %v3162_v30, %v1043_v32 }
 0x196   : > { %v3510_v62 = vsel %vm3432_vm2, %v3130_v8, %v1021_v9  ;;  %v3525_v39 = vsel %vm3495_vm3, %v3191_v53, %v1018_v27  ;;  %v1042_v35 = vsel %vm4003_vm1, %v1039_v48, %v1041_v40  ;;  %v1045_v53 = vsel %vm4003_vm1, %v1041_v40, %v1035_v25  ;;  %v4078_v9 = vld [vmem:[#allocation4_spill] sm:$0xff] }
 0x197   : > { %v1138_v8 = vadd.f32 %v3515_v31, %v3510_v62  ;;  %v1696_v11 = vadd.f32 %v3525_v39, %v3520_v45  ;;  %vm3542_vm2 = vcmp.eq.s32.totalorder %v989_v34, 1  ;;  %v3553_v30 = vsel %vm3443_vm14, %v3142_v17, %v1044_v18  ;;  %v1170_v18 = vld [vmem:[%s3966_s7] sm:$0xff] }
 0x198   : > { %v1085_v26 = vpop.permute.xlu0 %1084  ;;  %vm4065_vm0 = vcmp.lt.s32.totalorder %v3295_v21, 16  ;;  %v1141_v40 = vadd.f32 %v3536_v50, %v3553_v30  ;;  %v3562_v46 = vsel %vm3542_vm2, %v3173_v44, %v1042_v35  ;;  %v3567_v48 = vsel %vm3546_vm13, %v3196_v58, %v1045_v53 }
 0x199   : > { %v1087_v60 = vpop.permute.xlu1 %1086  ;;  %1139 = vadd.xlane.f32.xlu0 %v1138_v8  ;;  %1697 = vadd.xlane.f32.xlu1 %v1696_v11  ;;  %v1068_v22 = vsel %vm4065_vm0, %v1059_v49, %v1061_v6  ;;  %v927_v17 = vsel %vm926_vm15, %v3423_v54, %v925_v7  ;;  %vm4066_vm14 = vcmp.lt.s32.totalorder %v3295_v21, 112  ;;  %vm4068_vm1 = vcmp.lt.s32.totalorder %v3295_v21, 16 }
 0x19a   : > { %v1092_v47 = vsel %vm4066_vm14, %v3485_v24, %v1085_v26  ;;  %vm4067_vm0 = vmmov %vm4066_vm14  ;;  %v3587_v7 = vsel %vm3310_vm4, %v3164_v33, %v1068_v22  ;;  %v928_v34 = vsel %vm926_vm15, %v3299_v3, %v3423_v54  ;;  %v3613_v13 = vsel %vm3495_vm3, %v3150_v20, %v927_v17 }
 0x19b   : > { %v1091_v4 = vsel %vm4067_vm0, %v1085_v26, %v1087_v60  ;;  %v3603_v33 = vsel %vm3375_vm10, %v3182_v51, %v1092_v47  ;;  %vm4071_vm15 = vmmov %vm4068_vm1 }
 0x19c   : > { %v1065_v25 = vpop.permute.xlu0 %1064  ;;  %v3608_v3 = vsel %vm3342_vm9, %v3206_v63, %v1091_v4  ;;  %vm4072_vm10 = vmmov %vm4068_vm1  ;;  %v3625_v63 = vsel %vm3491_vm8, %v3139_v16, %v928_v34 }
 0x19d   : > { %v1069_v44 = vsel %vm4068_vm1, %v1065_v25, %v1059_v49  ;;  %v971_v61 = vpop.permute.xlu1 %970  ;;  %1142 = vadd.xlane.f32.xlu0 %v1141_v40  ;;  %v1699_v49 = vadd.f32 %v3567_v48, %v3562_v46  ;;  %v1147_v20 = vadd.f32 %v3608_v3, %v3603_v33  ;;  %vm4073_vm3 = vmmov %vm4067_vm0 }
 0x19e   : > { %v3582_v58 = vsel %vm3323_vm6, %v3170_v38, %v1069_v44  ;;  %vm4069_vm6 = vcmp.lt.s32.totalorder %v3295_v21, 127  ;;  %vm4074_vm8 = vmmov %vm4067_vm0 }
 0x19f   : > { %v1144_v32 = vadd.f32 %v3587_v7, %v3582_v58  ;;  %v973_v38 = vsel %vm4069_vm6, %v3454_v55, %v971_v61  ;;  %vm4070_vm4 = vmmov %vm4069_vm6 }
 0x1a0   : > { %v1063_v14 = vpop.permute.xlu0 %1062  ;;  %v976_v54 = vsel %vm4070_vm4, %v971_v61, %v3340_v19  ;;  %v1690_v19 = vadd.f32 %v3613_v13, %v3625_v63  ;;  %v3634_v0 = vsel %vm3542_vm2, %v3155_v23, %v973_v38 }
 0x1a1   : > { %v1066_v55 = vsel %vm4071_vm15, %v1063_v14, %v1065_v25  ;;  %v1067_v51 = vsel %vm4072_vm10, %v1061_v6, %v1063_v14  ;;  %1700 = vadd.xlane.f32.xlu0 %v1699_v49  ;;  %1145 = vadd.xlane.f32.xlu1 %v1144_v32  ;;  %v1089_v56 = vpop.permute.xlu1 %1088  ;;  %v3639_v6 = vsel %vm3546_vm13, %v3218_v42, %v976_v54 }
 0x1a2   : > { %v3644_v16 = vsel %vm3314_vm5, %v3224_v2, %v1067_v51  ;;  %v3649_v59 = vsel %vm3327_vm7, %v3214_v28, %v1066_v55  ;;  %v1090_v29 = vsel %vm4073_vm3, %v1087_v60, %v1089_v56  ;;  %v1093_v23 = vsel %vm4074_vm8, %v1089_v56, %v3485_v24 }
 0x1a3   : > { %v3658_v42 = vadd.f32 %v3186_v52, %v3242_v12  ;;  %v3662_v2 = vadd.f32 %v3193_v57, %v3242_v12  ;;  %v1693_v28 = vadd.f32 %v3639_v6, %v3634_v0  ;;  %v1702_v36 = vadd.f32 %v3649_v59, %v3644_v16  ;;  %v4076_v57 = vld [vmem:[#allocation6_spill] sm:$0xff]  ;;  %v4077_v12 = vld [vmem:[#allocation3_spill] sm:$0xff] }
 0x1a4   : > { %v3671_v21 = vsel %vm3387_vm11, %v3208_v1, %v1090_v29  ;;  %v3676_v52 = vsel %vm3391_vm12, %v4075_v10, %v1093_v23  ;;  %v3680_v24 = vadd.f32 %v4077_v12, %v4076_v57  ;;  %v3684_v5 = vadd.f32 %v4078_v9, %v4076_v57 }
 0x1a5   : > { %1148 = vadd.xlane.f32.xlu0 %v1147_v20  ;;  %1691 = vadd.xlane.f32.xlu1 %v1690_v19  ;;  %v1705_v15 = vadd.f32 %v3676_v52, %v3671_v21  ;;  %v1714_v1 = vadd.f32 %v3662_v2, %v3658_v42  ;;  %vm4079_vm5 = vcmask 261120  }
 0x1a6   : > { %v1717_v37 = vadd.f32 %v3684_v5, %v3680_v24  ;;  %2663 = vmatprep.mubr.msk.f32.mxu0 %vm4079_vm5, %v1170_v18  ;;  %vm4080_vm7 = vmmov %vm4079_vm5 }
 0x1a7   : > { %vm4081_vm9 = vmmov %vm4079_vm5 }
 0x1a8   : > { %vm4082_vm11 = vmmov %vm4079_vm5 }
 0x1a9   : > { %1694 = vadd.xlane.f32.xlu0 %v1693_v28  ;;  %1703 = vadd.xlane.f32.xlu1 %v1702_v36  ;;  %vm4083_vm12 = vmmov %vm4079_vm5 }
 0x1aa   : > { %vm4084_vm1 = vmmov %vm4079_vm5 }
 0x1ab   : > { %vm4085_vm2 = vmmov %vm4084_vm1 }
 0x1ac   : > { %vm4086_vm13 = vmmov %vm4084_vm1 }
 0x1ad   : > { %1706 = vadd.xlane.f32.xlu0 %v1705_v15  ;;  %1715 = vadd.xlane.f32.xlu1 %v1714_v1  ;;  %vm4087_vm14 = vmmov %vm4084_vm1 }
 0x1ae   : > { %vm4088_vm0 = vmmov %vm4084_vm1 }
 0x1af   : > { %vm4089_vm6 = vmmov %vm4088_vm0 }
 0x1b0   : > { %vm4090_vm4 = vmmov %vm4088_vm0 }
 0x1b1   : > { %1718 = vadd.xlane.f32.xlu0 %v1717_v37  ;;  %v1171_v37 = vld [vmem:[%s3966_s7 + $0x8] sm:$0xff]  ;;  %vm4091_vm15 = vmmov %vm4088_vm0 }
 0x1b2   : > { %vm4092_vm10 = vmmov %vm4088_vm0 }
 0x1b3   : > { %vm4093_vm3 = vmmov %vm4088_vm0 }
 0x1b4   : > { %vm4094_vm8 = vmmov %vm4088_vm0 }
 0x1b5   : > { %vm4095_vm5 = vmmov %vm4088_vm0 }
 0x1da   : > { %v1161_v8 = vpop.xlane.xlu0 %1160 }
 0x1de   : > { %v1155_v26 = vpop.xlane.xlu0 %1154 }
 0x1e0   : > { %v1158_v11 = vpop.xlane.xlu1 %1157 }
 0x1e2   : > { %v1713_v53 = vpop.xlane.xlu0 %1712 }
 0x1e4   : > { %v1152_v35 = vpop.xlane.xlu1 %1151 }
 0x1e8   : > { %v1710_v60 = vpop.xlane.xlu1 %1709 }
 0x206   : > { %v1128_v43 = vpop.xlane.xlu0 %1127  ;;  %v1686_v27 = vpop.xlane.xlu1 %1685 }
 0x20a   : > { %v1131_v40 = vpop.xlane.xlu1 %1130 }
 0x20b   : > { %v1689_v22 = vpop.xlane.xlu0 %1688 }
 0x216   : > { %v1134_v17 = vpop.xlane.xlu1 %1133 }
 0x217   : > { %v1137_v25 = vpop.xlane.xlu0 %1136 }
 0x226   : > { %v1140_v47 = vpop.xlane.xlu0 %1139  ;;  %v1698_v44 = vpop.xlane.xlu1 %1697 }
 0x227   : > { %v1162_v4 = vadd.f32 %v1140_v47, %v1128_v43  ;;  %v1720_v19 = vadd.f32 %v1698_v44, %v1686_v27 }
 0x229   : > { %v1166_v49 = vadd.f32 %v1162_v4, %v1152_v35  ;;  %v1724_v12 = vadd.f32 %v1720_v19, %v1710_v60  ;;  %v1173_v60 = vld [vmem:[%s3966_s7 + $0x18] sm:$0xff] }
 0x22a   : > { %v1143_v61 = vpop.xlane.xlu0 %1142 }
 0x22b   : > { %v1163_v34 = vadd.f32 %v1143_v61, %v1131_v40  ;;  %v1307_v40 = vld [vmem:[%s3967_s8] sm:$0xff] }
 0x22c   : > { %2677 = vmatprep.mubr.msk.f32.mxu1 %vm4087_vm14, %v1307_v40  ;;  %vm4103_vm14 = vmmov %vm4088_vm0 }
 0x22d   : > { %v1167_v32 = vadd.f32 %v1163_v34, %v1155_v26  ;;  %v1172_v26 = vld [vmem:[%s3966_s7 + $0x10] sm:$0xff] }
 0x22e   : > { %v1146_v38 = vpop.xlane.xlu1 %1145  ;;  %v1701_v14 = vpop.xlane.xlu0 %1700 }
 0x22f   : > { %v2735_v54 = vpack.c.bf16 %v1167_v32, %v1166_v49  ;;  %v1164_v55 = vadd.f32 %v1146_v38, %v1134_v17  ;;  %v1721_v51 = vadd.f32 %v1701_v14, %v1689_v22 }
 0x231   : > { %2736 = vmatprep.subr.bf16.mxu0 %v2735_v54  ;;  %v1168_v23 = vadd.f32 %v1164_v55, %v1158_v11  ;;  %v1725_v28 = vadd.f32 %v1721_v51, %v1713_v53 }
 0x232   : > { %v1692_v56 = vpop.xlane.xlu1 %1691  ;;  %2738 = vmatpush3.bf16.msra.mxu0 %v2735_v54  ;;  %v1149_v20 = vpop.xlane.xlu0 %1148 }
 0x233   : > { %v1165_v29 = vadd.f32 %v1149_v20, %v1137_v25  ;;  %v2751_v15 = vpack.c.bf16 %v1725_v28, %v1724_v12 }
 0x235   : > { %v1169_v36 = vadd.f32 %v1165_v29, %v1161_v8 }
 0x236   : > { %v1704_v10 = vpop.xlane.xlu1 %1703  ;;  %v1695_v57 = vpop.xlane.xlu0 %1694 }
 0x237   : > { %v2739_v9 = vpack.c.bf16 %v1169_v36, %v1168_v23  ;;  %v1722_v35 = vadd.f32 %v1704_v10, %v1692_v56 }
 0x239   : > { %2740 = vmatprep.subr.bf16.mxu0 %v2739_v9 }
 0x23a   : > { %2742 = vmatpush3.bf16.msra.mxu0 %v2739_v9  ;;  %v1707_v1 = vpop.xlane.xlu0 %1706  ;;  %v1716_v11 = vpop.xlane.xlu1 %1715 }
 0x23b   : > { %2752 = vmatprep.subr.bf16.mxu0 %v2751_v15  ;;  %v1723_v8 = vadd.f32 %v1707_v1, %v1695_v57  ;;  %v1726_v43 = vadd.f32 %v1722_v35, %v1716_v11 }
 0x23d   : > { %2664 = vmatmul.mubr.msk.f32.vlgmr.msra.gmra.mrb[20].mxu0 %vm4080_vm7, %v1171_v37  ;;  %vm4096_vm7 = vmmov %vm4088_vm0 }
 0x23e   : > { %2754 = vmatpush3.bf16.msra.mxu0 %v2751_v15  ;;  %v1719_v53 = vpop.xlane.xlu0 %1718  ;;  %2666 = vmatprep.mubr.msk.f32.mxu0 %vm4081_vm9, %v1172_v26  ;;  %vm4097_vm9 = vmmov %vm4088_vm0 }
 0x23f   : > { %v1727_v27 = vadd.f32 %v1723_v8, %v1719_v53 }
 0x241   : > { %v2755_v22 = vpack.c.bf16 %v1727_v27, %v1726_v43  ;;  %2667 = vmatmul.mubr.msk.f32.gmra.mrb[22].mxu0 %vm4082_vm11, %v1173_v60  ;;  %vm4098_vm11 = vmmov %vm4088_vm0 }
 0x242   : > { %2703 = vmatprep.mubr.msk.f32.mxu0 %vm4083_vm12, %v1170_v18  ;;  %vm4099_vm12 = vmmov %vm4088_vm0 }
 0x243   : > { %2756 = vmatprep.subr.bf16.mxu0 %v2755_v22 }
 0x244   : > { %2758 = vmatpush3.bf16.msra.mxu0 %v2755_v22 }
 0x247   : > { %2704 = vmatmul.mubr.msk.f32.vlgmr.msra.gmra.mrb[24].mxu0 %vm4084_vm1, %v1171_v37  ;;  %vm4100_vm1 = vmmov %vm4088_vm0 }
 0x248   : > { %2706 = vmatprep.mubr.msk.f32.mxu0 %vm4085_vm2, %v1172_v26  ;;  %vm4101_vm2 = vmmov %vm4088_vm0 }
 0x24b   : > { %2707 = vmatmul.mubr.msk.f32.gmra.mrb[26].mxu0 %vm4086_vm13, %v1173_v60  ;;  %vm4102_vm13 = vmmov %vm4088_vm0 }
 0x24c   : > { %2717 = vmatprep.mubr.msk.f32.mxu0 %vm4088_vm0, %v1307_v40 }
 0x310   : > { %v3717_v25 = vpop.f32.mrb[20].mxu0 }
 0x311   : > { %v1272_v18 = vmul.f32 %v3717_v25, %v3717_v25  ;;  %v3721_v17 = vpop.f32.mrb[21].mxu0 }
 0x312   : > { %v1271_v47 = vmul.f32 %v3721_v17, %v3721_v17 }
 0x313   : > { %v1276_v4 = vmul.f32 %v3717_v25, %v1272_v18 }
 0x314   : > { %v1275_v44 = vmul.f32 %v1271_v47, %v3721_v17  ;;  %v3727_v61 = vpop.f32.mrb[22].mxu0 }
 0x315   : > { %v1280_v34 = vmul.f32 0.044715, %v1276_v4  ;;  %v1274_v49 = vmul.f32 %v3727_v61, %v3727_v61  ;;  %v3731_v32 = vpop.f32.mrb[23].mxu0 }
 0x316   : > { %v1279_v38 = vmul.f32 0.044715, %v1275_v44  ;;  %v1273_v14 = vmul.f32 %v3731_v32, %v3731_v32 }
 0x317   : > { %v1284_v54 = vadd.f32 %v3717_v25, %v1280_v34  ;;  %v1278_v55 = vmul.f32 %v3727_v61, %v1274_v49 }
 0x318   : > { %v1283_v51 = vadd.f32 %v1279_v38, %v3721_v17  ;;  %v1277_v56 = vmul.f32 %v1273_v14, %v3731_v32 }
 0x319   : > { %v1288_v20 = vmul.f32 0.7978846, %v1284_v54  ;;  %v1282_v19 = vmul.f32 0.044715, %v1278_v55 }
 0x31a   : > { %v1287_v29 = vmul.f32 0.7978846, %v1283_v51  ;;  %v1281_v23 = vmul.f32 0.044715, %v1277_v56  ;;  %v3739_v28 = vpop.f32.mrb[24].mxu0 }
 0x31b   : > { %2806 = vtanh.f32 %v1288_v20  ;;  %v1286_v36 = vadd.f32 %v3727_v61, %v1282_v19  ;;  %v1830_v10 = vmul.f32 %v3739_v28, %v3739_v28  ;;  %v3744_v57 = vpop.f32.mrb[25].mxu0 }
 0x31c   : > { %2808 = vtanh.f32 %v1287_v29  ;;  %v1285_v12 = vadd.f32 %v1281_v23, %v3731_v32  ;;  %v1829_v9 = vmul.f32 %v3744_v57, %v3744_v57 }
 0x31d   : > { %v1290_v15 = vmul.f32 0.7978846, %v1286_v36  ;;  %v1834_v1 = vmul.f32 %v3739_v28, %v1830_v10 }
 0x31e   : > { %v1289_v37 = vmul.f32 0.7978846, %v1285_v12  ;;  %v1833_v26 = vmul.f32 %v1829_v9, %v3744_v57  ;;  %v3751_v11 = vpop.f32.mrb[26].mxu0 }
 0x31f   : > { %2810 = vtanh.f32 %v1290_v15  ;;  %v1838_v35 = vmul.f32 0.044715, %v1834_v1  ;;  %v1832_v8 = vmul.f32 %v3751_v11, %v3751_v11  ;;  %v3755_v53 = vpop.f32.mrb[27].mxu0 }
 0x320   : > { %2812 = vtanh.f32 %v1289_v37  ;;  %v1837_v60 = vmul.f32 0.044715, %v1833_v26  ;;  %v1831_v43 = vmul.f32 %v3755_v53, %v3755_v53 }
 0x321   : > { %v1842_v27 = vadd.f32 %v3739_v28, %v1838_v35  ;;  %v1836_v22 = vmul.f32 %v3751_v11, %v1832_v8 }
 0x322   : > { %v1841_v40 = vadd.f32 %v1837_v60, %v3744_v57  ;;  %v1835_v18 = vmul.f32 %v1831_v43, %v3755_v53 }
 0x323   : > { %v1846_v47 = vmul.f32 0.7978846, %v1842_v27  ;;  %v1840_v4 = vmul.f32 0.044715, %v1836_v22 }
 0x324   : > { %v1845_v44 = vmul.f32 0.7978846, %v1841_v40  ;;  %v1839_v34 = vmul.f32 0.044715, %v1835_v18 }
 0x325   : > { %v2807_v49 = vpop.eup %2806  ;;  %2814 = vtanh.f32 %v1846_v47  ;;  %v1844_v38 = vadd.f32 %v3751_v11, %v1840_v4 }
 0x326   : > { %v2809_v14 = vpop.eup %2808  ;;  %v1296_v54 = vadd.f32 1.0, %v2807_v49  ;;  %2816 = vtanh.f32 %v1845_v44  ;;  %v1843_v55 = vadd.f32 %v1839_v34, %v3755_v53  ;;  %v1309_v49 = vld [vmem:[%s3967_s8 + $0x10] sm:$0xff] }
 0x327   : > { %v1295_v51 = vadd.f32 1.0, %v2809_v14  ;;  %v1848_v56 = vmul.f32 0.7978846, %v1844_v38 }
 0x328   : > { %v1300_v20 = vmul.f32 0.5, %v1296_v54  ;;  %v1847_v19 = vmul.f32 0.7978846, %v1843_v55  ;;  %v1310_v55 = vld [vmem:[%s3967_s8 + $0x18] sm:$0xff] }
 0x329   : > { %v2811_v29 = vpop.eup %2810  ;;  %v1299_v23 = vmul.f32 0.5, %v1295_v51  ;;  %2818 = vtanh.f32 %v1848_v56  ;;  %v1311_v51 = vld [vmem:[%s3967_s8 + $0x20] sm:$0xff] }
 0x32a   : > { %v2813_v36 = vpop.eup %2812  ;;  %v1304_v10 = vmul.f32 %v3717_v25, %v1300_v20  ;;  %v1298_v12 = vadd.f32 1.0, %v2811_v29  ;;  %2820 = vtanh.f32 %v1847_v19  ;;  %v1313_v20 = vld [vmem:[%s3967_s8 + $0x30] sm:$0xff]  ;;  %v1315_v19 = vld [vmem:[%s3967_s8 + $0x40] sm:$0xff]  ;;  %v1316_v29 = vld [vmem:[%s3967_s8 + $0x48] sm:$0xff] }
 0x32b   : > { %v1303_v9 = vmul.f32 %v1299_v23, %v3721_v17  ;;  %v1297_v15 = vadd.f32 1.0, %v2813_v36  ;;  %v1317_v23 = vld [vmem:[%s3967_s8 + $0x50] sm:$0xff]  ;;  %v1318_v36 = vld [vmem:[%s3967_s8 + $0x58] sm:$0xff] }
 0x32c   : > { %v1302_v1 = vmul.f32 0.5, %v1298_v12 }
 0x32d   : > { %v1301_v37 = vmul.f32 0.5, %v1297_v15  ;;  %v2743_v26 = vpack.c.bf16 %v1304_v10, %v1303_v9 }
 0x32e   : > { %v1306_v35 = vmul.f32 %v3727_v61, %v1302_v1  ;;  %v1308_v61 = vld [vmem:[%s3967_s8 + $0x8] sm:$0xff] }
 0x32f   : > { %v2815_v8 = vpop.eup %2814  ;;  %v1305_v60 = vmul.f32 %v1301_v37, %v3731_v32  ;;  %2744 = vmatprep.subr.bf16.mxu1 %v2743_v26 }
 0x330   : > { %v2817_v43 = vpop.eup %2816  ;;  %v1854_v27 = vadd.f32 1.0, %v2815_v8  ;;  %2746 = vmatpush3.bf16.msra.mxu1 %v2743_v26 }
 0x331   : > { %v1853_v22 = vadd.f32 1.0, %v2817_v43  ;;  %v2747_v40 = vpack.c.bf16 %v1306_v35, %v1305_v60 }
 0x332   : > { %v1858_v25 = vmul.f32 0.5, %v1854_v27 }
 0x333   : > { %v2819_v18 = vpop.eup %2818  ;;  %v1857_v47 = vmul.f32 0.5, %v1853_v22  ;;  %2748 = vmatprep.subr.bf16.mxu1 %v2747_v40 }
 0x334   : > { %v2821_v17 = vpop.eup %2820  ;;  %v1862_v4 = vmul.f32 %v3739_v28, %v1858_v25  ;;  %v1856_v44 = vadd.f32 1.0, %v2819_v18  ;;  %2750 = vmatpush3.bf16.msra.mxu1 %v2747_v40 }
 0x335   : > { %v1861_v32 = vmul.f32 %v1857_v47, %v3744_v57  ;;  %v1855_v34 = vadd.f32 1.0, %v2821_v17 }
 0x336   : > { %v1860_v38 = vmul.f32 0.5, %v1856_v44 }
 0x337   : > { %v1859_v14 = vmul.f32 0.5, %v1855_v34  ;;  %2678 = vmatmul.mubr.msk.f32.vlgmr.msra.gmra.mrb[28].mxu1 %vm4089_vm6, %v1308_v61  ;;  %v2759_v54 = vpack.c.bf16 %v1862_v4, %v1861_v32  ;;  %vm4104_vm6 = vmmov %vm4088_vm0 }
 0x338   : > { %v1864_v28 = vmul.f32 %v3751_v11, %v1860_v38  ;;  %2680 = vmatprep.mubr.msk.f32.mxu1 %vm4090_vm4, %v1309_v49  ;;  %v1312_v11 = vld [vmem:[%s3967_s8 + $0x28] sm:$0xff]  ;;  %vm4105_vm4 = vmmov %vm4088_vm0 }
 0x339   : > { %v1863_v57 = vmul.f32 %v1859_v14, %v3755_v53  ;;  %2760 = vmatprep.subr.bf16.mxu0 %v2759_v54  ;;  %v1314_v53 = vld [vmem:[%s3967_s8 + $0x38] sm:$0xff] }
 0x33a   : > { %2762 = vmatpush3.bf16.msra.mxu0 %v2759_v54 }
 0x33b   : > { %2681 = vmatmul.mubr.msk.f32.gmra.mrb[30].mxu1 %vm4091_vm15, %v1310_v55  ;;  %v2763_v56 = vpack.c.bf16 %v1864_v28, %v1863_v57  ;;  %vm4106_vm15 = vmmov %vm4088_vm0 }
 0x33c   : > { %2683 = vmatprep.mubr.msk.f32.mxu1 %vm4092_vm10, %v1311_v51  ;;  %vm4107_vm10 = vmmov %vm4088_vm0 }
 0x33d   : > { %2764 = vmatprep.subr.bf16.mxu0 %v2763_v56 }
 0x33e   : > { %2766 = vmatpush3.bf16.msra.mxu0 %v2763_v56 }
 0x33f   : > { %2684 = vmatmul.mubr.msk.f32.gmra.mrb[32].mxu1 %vm4093_vm3, %v1312_v11  ;;  %vm4108_vm3 = vmmov %vm4088_vm0 }
 0x340   : > { %2686 = vmatprep.mubr.msk.f32.mxu1 %vm4094_vm8, %v1313_v20  ;;  %vm4109_vm8 = vmmov %vm4088_vm0 }
 0x341   : > { %2718 = vmatmul.mubr.msk.f32.vlgmr.msra.gmra.mrb[28].mxu0 %vm4095_vm5, %v1308_v61  ;;  %vm2328_vm5 = vcmask 785408  }
 0x342   : > { %2720 = vmatprep.mubr.msk.f32.mxu0 %vm4096_vm7, %v1309_v49 }
 0x343   : > { %2687 = vmatmul.mubr.msk.f32.gmra.mrb[34].mxu1 %vm4097_vm9, %v1314_v53 }
 0x344   : > { %2689 = vmatprep.mubr.msk.f32.mxu1 %vm4098_vm11, %v1315_v19 }
 0x345   : > { %2721 = vmatmul.mubr.msk.f32.gmra.mrb[30].mxu0 %vm4099_vm12, %v1310_v55 }
 0x346   : > { %2723 = vmatprep.mubr.msk.f32.mxu0 %vm4100_vm1, %v1311_v51 }
 0x347   : > { %2690 = vmatmul.mubr.msk.f32.gmra.mrb[36].mxu1 %vm4101_vm2, %v1316_v29 }
 0x348   : > { %2692 = vmatprep.mubr.msk.f32.mxu1 %vm4102_vm13, %v1317_v23 }
 0x349   : > { %2724 = vmatmul.mubr.msk.f32.gmra.mrb[32].mxu0 %vm4103_vm14, %v1312_v11 }
 0x34a   : > { %2726 = vmatprep.mubr.msk.f32.mxu0 %vm4088_vm0, %v1313_v20 }
 0x34b   : > { %2693 = vmatmul.mubr.msk.f32.gmra.mrb[38].mxu1 %vm4104_vm6, %v1318_v36 }
 0x34c   : > { %2367 = vmatprep.mubr.bf16.mxu1 %v4044_v41 }
 0x34d   : > { %2727 = vmatmul.mubr.msk.f32.gmra.mrb[34].mxu0 %vm4105_vm4, %v1314_v53 }
 0x34e   : > { %2729 = vmatprep.mubr.msk.f32.mxu0 %vm4106_vm15, %v1315_v19 }
 0x351   : > { %2730 = vmatmul.mubr.msk.f32.gmra.mrb[36].mxu0 %vm4107_vm10, %v1316_v29 }
 0x352   : > { %2732 = vmatprep.mubr.msk.f32.mxu0 %vm4108_vm3, %v1317_v23 }
 0x355   : > { %2733 = vmatmul.mubr.msk.f32.gmra.mrb[38].mxu0 %vm4109_vm8, %v1318_v36 }
 0x356   : > { %2420 = vmatprep.mubr.bf16.mxu0 %v4044_v41 }
 0x40a   : > { %v2679_v10 = vpop.f32.mrb[28].mxu1 }
 0x40b   : > { %v1421_v12 = vpop.f32.mrb[29].mxu1 }
 0x40e   : > { %v2682_v9 = vpop.f32.mrb[30].mxu1 }
 0x40f   : > { %v1431_v15 = vpop.f32.mrb[31].mxu1 }
 0x412   : > { %v2685_v1 = vpop.f32.mrb[32].mxu1 }
 0x413   : > { %v1481_v37 = vmax.f32 %v2679_v10, %v2685_v1  ;;  %v1441_v26 = vpop.f32.mrb[33].mxu1 }
 0x414   : > { %v1480_v35 = vmax.f32 %v1421_v12, %v1441_v26  ;;  %v3830_v8 = vpop.f32.mrb[28].mxu0 }
 0x415   : > { %v3832_v60 = vpop.f32.mrb[29].mxu0 }
 0x416   : > { %v2688_v43 = vpop.f32.mrb[34].mxu1 }
 0x417   : > { %v1483_v27 = vmax.f32 %v2682_v9, %v2688_v43  ;;  %v1451_v22 = vpop.f32.mrb[35].mxu1 }
 0x418   : > { %v1482_v40 = vmax.f32 %v1431_v15, %v1451_v22  ;;  %v3834_v25 = vpop.f32.mrb[30].mxu0 }
 0x419   : > { %v3836_v18 = vpop.f32.mrb[31].mxu0 }
 0x41a   : > { %v2691_v47 = vpop.f32.mrb[36].mxu1 }
 0x41b   : > { %v1485_v17 = vmax.f32 %v1481_v37, %v2691_v47  ;;  %v1461_v4 = vpop.f32.mrb[37].mxu1 }
 0x41c   : > { %v1484_v44 = vmax.f32 %v1480_v35, %v1461_v4  ;;  %v2725_v61 = vpop.f32.mrb[32].mxu0 }
 0x41d   : > { %v1489_v32 = vsub.f32 %v2679_v10, %v1485_v17  ;;  %v1501_v34 = vsub.f32 %v2685_v1, %v1485_v17  ;;  %v1513_v49 = vsub.f32 %v2691_v47, %v1485_v17  ;;  %v2039_v38 = vmax.f32 %v3830_v8, %v2725_v61  ;;  %v3839_v14 = vpop.f32.mrb[33].mxu0 }
 0x41e   : > { %v1488_v54 = vsub.f32 %v1421_v12, %v1484_v44  ;;  %v1500_v28 = vsub.f32 %v1441_v26, %v1484_v44  ;;  %v1512_v55 = vsub.f32 %v1461_v4, %v1484_v44  ;;  %v2694_v57 = vpop.f32.mrb[38].mxu1  ;;  %v2038_v51 = vmax.f32 %v3832_v60, %v3839_v14 }
 0x41f   : > { %v1494_v56 = vmul.f32 1.442695, %v1489_v32  ;;  %v1506_v11 = vmul.f32 1.442695, %v1501_v34  ;;  %v1518_v20 = vmul.f32 1.442695, %v1513_v49  ;;  %v1487_v53 = vmax.f32 %v1483_v27, %v2694_v57 }
 0x420   : > { %v1492_v19 = vmul.f32 1.442695, %v1488_v54  ;;  %v1504_v29 = vmul.f32 1.442695, %v1500_v28  ;;  %v1471_v1 = vpop.f32.mrb[39].mxu1  ;;  %v3843_v37 = vpop.f32.mrb[34].mxu0 }
 0x421   : > { %2822 = vpow2.f32 %v1494_v56  ;;  %v1491_v23 = vsub.f32 %v2682_v9, %v1487_v53  ;;  %v1503_v36 = vsub.f32 %v2688_v43, %v1487_v53  ;;  %v1515_v10 = vsub.f32 %v2694_v57, %v1487_v53  ;;  %v3847_v47 = vpop.f32.mrb[35].mxu0 }
 0x422   : > { %2824 = vpow2.f32 %v1506_v11  ;;  %v1516_v12 = vmul.f32 1.442695, %v1512_v55  ;;  %v1486_v26 = vmax.f32 %v1482_v40, %v1471_v1  ;;  %v2041_v35 = vmax.f32 %v3834_v25, %v3843_v37 }
 0x423   : > { %2826 = vpow2.f32 %v1518_v20  ;;  %v1498_v17 = vmul.f32 1.442695, %v1491_v23  ;;  %v1510_v27 = vmul.f32 1.442695, %v1503_v36  ;;  %v1522_v32 = vmul.f32 1.442695, %v1515_v10 }
 0x424   : > { %2828 = vpow2.f32 %v1492_v19  ;;  %v1490_v4 = vsub.f32 %v1431_v15, %v1486_v26  ;;  %v1502_v44 = vsub.f32 %v1451_v22, %v1486_v26  ;;  %v1514_v9 = vsub.f32 %v1471_v1, %v1486_v26  ;;  %v2731_v43 = vpop.f32.mrb[36].mxu0 }
 0x425   : > { %2830 = vpow2.f32 %v1504_v29  ;;  %v2040_v34 = vmax.f32 %v3836_v18, %v3847_v47  ;;  %v2043_v49 = vmax.f32 %v2039_v38, %v2731_v43  ;;  %v2019_v40 = vpop.f32.mrb[37].mxu0 }
 0x426   : > { %2832 = vpow2.f32 %v1516_v12  ;;  %v1496_v54 = vmul.f32 1.442695, %v1490_v4  ;;  %v1508_v28 = vmul.f32 1.442695, %v1502_v44  ;;  %v1520_v15 = vmul.f32 1.442695, %v1514_v9 }
 0x427   : > { %2834 = vpow2.f32 %v1498_v17  ;;  %v2047_v55 = vsub.f32 %v3830_v8, %v2043_v49  ;;  %v2059_v57 = vsub.f32 %v2725_v61, %v2043_v49  ;;  %v2071_v56 = vsub.f32 %v2731_v43, %v2043_v49 }
 0x428   : > { %2836 = vpow2.f32 %v1510_v27  ;;  %v2042_v22 = vmax.f32 %v2038_v51, %v2019_v40  ;;  %v2734_v11 = vpop.f32.mrb[38].mxu0 }
 0x429   : > { %2838 = vpow2.f32 %v1522_v32  ;;  %v2052_v20 = vmul.f32 1.442695, %v2047_v55  ;;  %v2064_v53 = vmul.f32 1.442695, %v2059_v57  ;;  %v2029_v23 = vpop.f32.mrb[39].mxu0  ;;  %v2045_v61 = vmax.f32 %v2041_v35, %v2734_v11 }
 0x42a   : > { %2840 = vpow2.f32 %v1496_v54  ;;  %v2046_v19 = vsub.f32 %v3832_v60, %v2042_v22  ;;  %v2058_v38 = vsub.f32 %v3839_v14, %v2042_v22  ;;  %v2070_v29 = vsub.f32 %v2019_v40, %v2042_v22 }
 0x42b   : > { %v3854_v36 = vpop.eup %2822  ;;  %2842 = vpow2.f32 %v1508_v28  ;;  %v2076_v8 = vmul.f32 1.442695, %v2071_v56  ;;  %v2044_v10 = vmax.f32 %v2040_v34, %v2029_v23  ;;  %v2049_v60 = vsub.f32 %v3834_v25, %v2045_v61 }
 0x42c   : > { %v2825_v1 = vpop.eup %2824  ;;  %2844 = vpow2.f32 %v1520_v15  ;;  %v2050_v51 = vmul.f32 1.442695, %v2046_v19  ;;  %v2062_v12 = vmul.f32 1.442695, %v2058_v38  ;;  %v2061_v14 = vsub.f32 %v3843_v37, %v2045_v61 }
 0x42d   : > { %v2827_v26 = vpop.eup %2826  ;;  %v1525_v17 = vadd.f32 %v2825_v1, %v3854_v36  ;;  %2846 = vpow2.f32 %v2052_v20  ;;  %v2073_v4 = vsub.f32 %v2734_v11, %v2045_v61  ;;  %v2048_v44 = vsub.f32 %v3836_v18, %v2044_v10 }
 0x42e   : > { %v3859_v27 = vpop.eup %2828  ;;  %2848 = vpow2.f32 %v2064_v53  ;;  %v2060_v35 = vsub.f32 %v3847_v47, %v2044_v10  ;;  %v2074_v32 = vmul.f32 1.442695, %v2070_v29  ;;  %v2056_v25 = vmul.f32 1.442695, %v2049_v60 }
 0x42f   : > { %v2831_v9 = vpop.eup %2830  ;;  %v1529_v43 = vadd.f32 %v2827_v26, %v1525_v17  ;;  %2850 = vpow2.f32 %v2076_v8  ;;  %v2072_v37 = vsub.f32 %v2029_v23, %v2044_v10  ;;  %v2068_v55 = vmul.f32 1.442695, %v2061_v14 }
 0x430   : > { %v2833_v34 = vpop.eup %2832  ;;  %v1524_v49 = vadd.f32 %v2831_v9, %v3859_v27  ;;  %2852 = vpow2.f32 %v2050_v51  ;;  %v2080_v56 = vmul.f32 1.442695, %v2073_v4  ;;  %v2054_v11 = vmul.f32 1.442695, %v2048_v44 }
 0x431   : > { %v2835_v40 = vpop.eup %2834  ;;  %2854 = vrcp.f32 %v1529_v43  ;;  %v2066_v38 = vmul.f32 1.442695, %v2060_v35  ;;  %v2078_v8 = vmul.f32 1.442695, %v2072_v37 }
 0x432   : > { %v2837_v54 = vpop.eup %2836  ;;  %v1528_v28 = vadd.f32 %v2833_v34, %v1524_v49  ;;  %2856 = vpow2.f32 %v2062_v12 }
 0x433   : > { %v2839_v57 = vpop.eup %2838  ;;  %v1527_v18 = vadd.f32 %v2837_v54, %v2835_v40  ;;  %2858 = vpow2.f32 %v2074_v32 }
 0x434   : > { %v2841_v47 = vpop.eup %2840  ;;  %2860 = vrcp.f32 %v1528_v28 }
 0x435   : > { %v2843_v15 = vpop.eup %2842  ;;  %v1531_v22 = vadd.f32 %v2839_v57, %v1527_v18  ;;  %2862 = vpow2.f32 %v2056_v25 }
 0x436   : > { %v2845_v20 = vpop.eup %2844  ;;  %v1526_v53 = vadd.f32 %v2843_v15, %v2841_v47  ;;  %2864 = vpow2.f32 %v2068_v55 }
 0x437   : > { %v2847_v19 = vpop.eup %2846  ;;  %2866 = vrcp.f32 %v1531_v22 }
 0x438   : > { %v2849_v29 = vpop.eup %2848  ;;  %v1530_v23 = vadd.f32 %v2845_v20, %v1526_v53  ;;  %2868 = vpow2.f32 %v2080_v56 }
 0x439   : > { %v2851_v61 = vpop.eup %2850  ;;  %v2083_v10 = vadd.f32 %v2849_v29, %v2847_v19  ;;  %2870 = vpow2.f32 %v2054_v11 }
 0x43a   : > { %v2853_v51 = vpop.eup %2852  ;;  %2872 = vrcp.f32 %v1530_v23 }
 0x43b   : > { %v2855_v12 = vpop.eup %2854  ;;  %v2087_v17 = vadd.f32 %v2851_v61, %v2083_v10  ;;  %2874 = vpow2.f32 %v2066_v38 }
 0x43c   : > { %v2857_v60 = vpop.eup %2856  ;;  %2876 = vpow2.f32 %v2078_v8  ;;  %v1545_v14 = vmul.f32 %v2855_v12, %v2825_v1  ;;  %v1541_v4 = vmul.f32 %v2855_v12, %v3854_v36  ;;  %v1549_v44 = vmul.f32 %v2855_v12, %v2827_v26 }
 0x43d   : > { %v2859_v43 = vpop.eup %2858  ;;  %2878 = vrcp.f32 %v2087_v17  ;;  %v2082_v35 = vadd.f32 %v2857_v60, %v2853_v51 }
 0x43e   : > { %v2861_v32 = vpop.eup %2860  ;;  %1579 = vperm.xlu1 %2785, %v1545_v14   ;;  %1559 = vperm.xlu0 %2784, %v1541_v4  }
 0x43f   : > { %v2863_v49 = vpop.eup %2862  ;;  %v2086_v25 = vadd.f32 %v2859_v43, %v2082_v35  ;;  %v1544_v37 = vmul.f32 %v2861_v32, %v2831_v9  ;;  %v1548_v28 = vmul.f32 %v2861_v32, %v2833_v34  ;;  %v1540_v55 = vmul.f32 %v2861_v32, %v3859_v27 }
 0x440   : > { %v2865_v18 = vpop.eup %2864 }
 0x441   : > { %v2867_v56 = vpop.eup %2866  ;;  %2880 = vrcp.f32 %v2086_v25  ;;  %v2085_v22 = vadd.f32 %v2865_v18, %v2863_v49 }
 0x442   : > { %v2869_v1 = vpop.eup %2868  ;;  %1599 = vperm.xlu1 %2785, %v1549_v44   ;;  %1574 = vperm.xlu0 %2784, %v1544_v37   ;;  %v1543_v36 = vmul.f32 %v2867_v56, %v2835_v40  ;;  %v1547_v26 = vmul.f32 %v2867_v56, %v2837_v54  ;;  %v1551_v11 = vmul.f32 %v2867_v56, %v2839_v57 }
 0x443   : > { %v2871_v53 = vpop.eup %2870  ;;  %v2089_v38 = vadd.f32 %v2869_v1, %v2085_v22 }
 0x444   : > { %v2873_v23 = vpop.eup %2872 }
 0x445   : > { %v2875_v8 = vpop.eup %2874  ;;  %2882 = vrcp.f32 %v2089_v38  ;;  %v1542_v10 = vmul.f32 %v2873_v23, %v2841_v47  ;;  %v1546_v9 = vmul.f32 %v2873_v23, %v2843_v15  ;;  %v1550_v34 = vmul.f32 %v2873_v23, %v2845_v20  ;;  %v4112_v38 = vld [vmem:[#allocation19_spill] sm:$0xff] }
 0x446   : > { %v2877_v12 = vpop.eup %2876  ;;  %v2084_v27 = vadd.f32 %v2875_v8, %v2871_v53  ;;  %1594 = vperm.xlu0 %2784, %v1548_v28   ;;  %1554 = vperm.xlu1 %2785, %v1540_v55  }
 0x447   : > { %v2879_v17 = vpop.eup %2878 }
 0x448   : > { %v2088_v14 = vadd.f32 %v2877_v12, %v2084_v27  ;;  %v2099_v4 = vmul.f32 %v2879_v17, %v2847_v19  ;;  %v2103_v44 = vmul.f32 %v2879_v17, %v2849_v29  ;;  %v2107_v35 = vmul.f32 %v2879_v17, %v2851_v61  ;;  %v2294_v61 = vld [vmem:[%s3969_s10] sm:$0xff] }
 0x44a   : > { %2884 = vrcp.f32 %v2088_v14  ;;  %1569 = vperm.xlu1 %2785, %v1543_v36   ;;  %1564 = vperm.xlu0 %2784, %v1542_v10   ;;  %v4110_v36 = vld [vmem:[#allocation24_spill] sm:$0xff]  ;;  %v4114_v14 = vld [vmem:[#allocation29_spill] sm:$0xff] }
 0x44b   : > { %v2881_v40 = vpop.eup %2880 }
 0x44c   : > { %v2102_v54 = vmul.f32 %v2881_v40, %v2857_v60  ;;  %v2098_v57 = vmul.f32 %v2881_v40, %v2853_v51  ;;  %v2106_v32 = vmul.f32 %v2881_v40, %v2859_v43  ;;  %v2296_v51 = vld [vmem:[%s3969_s10 + $0x10] sm:$0xff]  ;;  %v2295_v60 = vld [vmem:[%s3969_s10 + $0x8] sm:$0xff]  ;;  %v2297_v43 = vld [vmem:[%s3969_s10 + $0x18] sm:$0xff] }
 0x44d   : > { %v4116_v40 = vld [vmem:[#allocation27_spill] sm:$0xff] }
 0x44e   : > { %1589 = vperm.xlu1 %2785, %v1547_v26   ;;  %1584 = vperm.xlu0 %2784, %v1546_v9  }
 0x44f   : > { %v2883_v47 = vpop.eup %2882 }
 0x450   : > { %v2101_v15 = vmul.f32 %v2883_v47, %v2863_v49  ;;  %v2105_v20 = vmul.f32 %v2883_v47, %v2865_v18  ;;  %v2109_v25 = vmul.f32 %v2883_v47, %v2869_v1 }
 0x452   : > { %2117 = vperm.xlu1 %2785, %v2099_v4   ;;  %2132 = vperm.xlu0 %2784, %v2102_v54  }
 0x454   : > { %v2885_v37 = vpop.eup %2884 }
 0x455   : > { %v2100_v28 = vmul.f32 %v2885_v37, %v2871_v53  ;;  %v2104_v19 = vmul.f32 %v2885_v37, %v2875_v8  ;;  %v2108_v29 = vmul.f32 %v2885_v37, %v2877_v12  ;;  %v4113_v8 = vld [vmem:[#allocation20_spill] sm:$0xff] }
 0x456   : > { %2137 = vperm.xlu1 %2785, %v2103_v44   ;;  %v4115_v44 = vld [vmem:[#allocation30_spill] sm:$0xff] }
 0x457   : > { %2122 = vperm.xlu0 %2784, %v2100_v28  }
 0x45a   : > { %2112 = vperm.xlu1 %2785, %v2098_v57   ;;  %v4117_v57 = vld [vmem:[#allocation28_spill] sm:$0xff] }
 0x45b   : > { %2152 = vperm.xlu0 %2784, %v2106_v32  }
 0x45e   : > { %2127 = vperm.xlu1 %2785, %v2101_v15  }
 0x45f   : > { %2142 = vperm.xlu0 %2784, %v2104_v19  }
 0x462   : > { %2147 = vperm.xlu1 %2785, %v2105_v20  }
 0x463   : > { %1604 = vperm.xlu0 %2784, %v1550_v34  }
 0x466   : > { %2157 = vperm.xlu1 %2785, %v2107_v35  }
 0x467   : > { %2162 = vperm.xlu0 %2784, %v2108_v29  }
 0x46a   : > { %1609 = vperm.xlu1 %2785, %v1551_v11   ;;  %v4111_v11 = vld [vmem:[#allocation23_spill] sm:$0xff] }
 0x46b   : > { %2300 = vperm.xlu0 %2784, %v2294_v61  }
 0x46e   : > { %2167 = vperm.xlu1 %2785, %v2109_v25  }
 0x46f   : > { %2310 = vperm.xlu0 %2784, %v2296_v51  }
 0x472   : > { %2305 = vperm.xlu1 %2785, %v2295_v60  }
 0x476   : > { %2315 = vperm.xlu1 %2785, %v2297_v43  }
 0x4bd   : > { %v1580_v49 = vpop.permute.xlu1 %1579  ;;  %v1560_v55 = vpop.permute.xlu0 %1559 }
 0x4be   : > { %v1614_v26 = vmul.f32 %v1560_v55, %v4110_v36  ;;  %v1615_v53 = vmul.f32 %v1560_v55, %v4111_v11  ;;  %v1623_v47 = vmul.f32 %v1580_v49, %v3536_v50  ;;  %v1622_v61 = vmul.f32 %v1580_v49, %v3553_v30  ;;  %v4119_v36 = vld [vmem:[#allocation10_spill] sm:$0xff] }
 0x4c1   : > { %v1600_v18 = vpop.permute.xlu1 %1599  ;;  %v1575_v56 = vpop.permute.xlu0 %1574 }
 0x4c2   : > { %v1621_v12 = vmul.f32 %v1575_v56, %v3515_v31  ;;  %v1620_v25 = vmul.f32 %v1575_v56, %v3510_v62  ;;  %v4118_v62 = vld [vmem:[#allocation16_spill] sm:$0xff] }
 0x4c4   : > { %v2279_v28 = vpack.c.bf16 %v1623_v47, %v1621_v12  ;;  %v2278_v51 = vpack.c.bf16 %v1622_v61, %v1620_v25  ;;  %v4124_v12 = vld [vmem:[#allocation21_spill] sm:$0xff]  ;;  %v4126_v61 = vld [vmem:[#allocation14_spill] sm:$0xff] }
 0x4c5   : > { %v1555_v22 = vpop.permute.xlu1 %1554  ;;  %v1595_v1 = vpop.permute.xlu0 %1594 }
 0x4c6   : > { %v1612_v23 = vmul.f32 %v1555_v22, %v4112_v38  ;;  %v1613_v10 = vmul.f32 %v1555_v22, %v4113_v8  ;;  %v1629_v56 = vmul.f32 %v1595_v1, %v4118_v62  ;;  %v4121_v38 = vld [vmem:[#allocation9_spill] sm:$0xff] }
 0x4c7   : > { %v4122_v8 = vld [vmem:[#allocation25_spill] sm:$0xff] }
 0x4c8   : > { %v2270_v9 = vpack.c.bf16 %v1614_v26, %v1612_v23  ;;  %v2271_v34 = vpack.c.bf16 %v1615_v53, %v1613_v10  ;;  %v1630_v23 = vmul.f32 %v1600_v18, %v4121_v38 }
 0x4c9   : > { %v1570_v27 = vpop.permute.xlu1 %1569  ;;  %v1565_v17 = vpop.permute.xlu0 %1564 }
 0x4ca   : > { %v1618_v4 = vmul.f32 %v1570_v27, %v4114_v14  ;;  %v1619_v35 = vmul.f32 %v1570_v27, %v4115_v44  ;;  %v1616_v54 = vmul.f32 %v1565_v17, %v4116_v40  ;;  %v1617_v32 = vmul.f32 %v1565_v17, %v4117_v57  ;;  %2335 = vmatprep.subr.bf16.mxu1 %v2271_v34  ;;  %v4125_v17 = vld [vmem:[#allocation22_spill] sm:$0xff] }
 0x4cb   : > { %2336 = vmatpush1.bf16.msra.mxu1 %v2270_v9  ;;  %v4123_v9 = vld [vmem:[#allocation26_spill] sm:$0xff] }
 0x4cc   : > { %v2274_v15 = vpack.c.bf16 %v1618_v4, %v1616_v54  ;;  %v2275_v20 = vpack.c.bf16 %v1619_v35, %v1617_v32 }
 0x4cd   : > { %v1590_v37 = vpop.permute.xlu1 %1589  ;;  %v1585_v31 = vpop.permute.xlu0 %1584 }
 0x4ce   : > { %v1627_v19 = vmul.f32 %v1590_v37, %v3608_v3  ;;  %v1625_v29 = vmul.f32 %v1585_v31, %v3587_v7  ;;  %2337 = vmatprep.subr.bf16.mxu1 %v2275_v20  ;;  %v1626_v60 = vmul.f32 %v1590_v37, %v3603_v33  ;;  %v1624_v50 = vmul.f32 %v1585_v31, %v3582_v58  ;;  %v4120_v7 = vld [vmem:[#allocation15_spill] sm:$0xff] }
 0x4cf   : > { %2338 = vmatpush1.bf16.msra.mxu1 %v2274_v15  ;;  %v1631_v3 = vmul.f32 %v1600_v18, %v4119_v36  ;;  %v1628_v26 = vmul.f32 %v1595_v1, %v4120_v7  ;;  %v4131_v36 = vld [vmem:[#allocation8_spill] sm:$0xff]  ;;  %v4132_v7 = vld [vmem:[#allocation7_spill] sm:$0xff] }
 0x4d0   : > { %2339 = vmatprep.subr.bf16.mxu1 %v2279_v28  ;;  %v2283_v22 = vpack.c.bf16 %v1627_v19, %v1625_v29  ;;  %v2282_v11 = vpack.c.bf16 %v1626_v60, %v1624_v50  ;;  %v4127_v60 = vld [vmem:[#allocation18_spill] sm:$0xff] }
 0x4d1   : > { %v2118_v43 = vpop.permute.xlu1 %2117  ;;  %v2133_v55 = vpop.permute.xlu0 %2132  ;;  %v2287_v49 = vpack.c.bf16 %v1631_v3, %v1629_v56  ;;  %v2286_v58 = vpack.c.bf16 %v1630_v23, %v1628_v26  ;;  %v4130_v56 = vld [vmem:[#allocation12_spill] sm:$0xff] }
 0x4d2   : > { %v2172_v10 = vmul.f32 %v2118_v43, %v4122_v8  ;;  %v2173_v34 = vmul.f32 %v2118_v43, %v4123_v9  ;;  %v2179_v15 = vmul.f32 %v2133_v55, %v3525_v39  ;;  %v2804_v9 = vld [vmem:[%s3968_s9] sm:$0xff]  }
 0x4d3   : > { %2340 = vmatpush1.bf16.msra.mxu1 %v2278_v51 }
 0x4d4   : > { %2341 = vmatprep.subr.bf16.mxu1 %v2283_v22 }
 0x4d5   : > { %v2138_v30 = vpop.permute.xlu1 %2137 }
 0x4d6   : > { %v2123_v53 = vpop.permute.xlu0 %2122  ;;  %v2181_v35 = vmul.f32 %v2138_v30, %v3567_v48  ;;  %v2180_v37 = vmul.f32 %v2138_v30, %v3562_v46 }
 0x4d7   : > { %2342 = vmatpush1.bf16.msra.mxu1 %v2282_v11  ;;  %v2174_v18 = vmul.f32 %v2123_v53, %v3625_v63  ;;  %v2175_v54 = vmul.f32 %v2123_v53, %v3613_v13  ;;  %v2178_v13 = vmul.f32 %v2133_v55, %v3520_v45  ;;  %v4128_v45 = vld [vmem:[#allocation11_spill] sm:$0xff]  ;;  %v4129_v55 = vld [vmem:[#allocation13_spill] sm:$0xff] }
 0x4d8   : > { %2343 = vmatprep.subr.bf16.mxu1 %v2287_v49  ;;  %v2281_v48 = vpack.c.bf16 %v2181_v35, %v2179_v15  ;;  %v4133_v11 = vld [vmem:[#allocation17_spill] sm:$0xff] }
 0x4d9   : > { %v2113_v33 = vpop.permute.xlu1 %2112 }
 0x4da   : > { %v2170_v27 = vmul.f32 %v2113_v33, %v4124_v12  ;;  %v2171_v14 = vmul.f32 %v2113_v33, %v4125_v17  ;;  %v2153_v4 = vpop.permute.xlu0 %2152 }
 0x4db   : > { %2344 = vmatpush1.bf16.msra.mxu1 %v2286_v58  ;;  %v2186_v30 = vmul.f32 %v2153_v4, %v4133_v11 }
 0x4dc   : > { %v2272_v1 = vpack.c.bf16 %v2172_v10, %v2170_v27  ;;  %v2273_v44 = vpack.c.bf16 %v2173_v34, %v2171_v14 }
 0x4dd   : > { %v2128_v40 = vpop.permute.xlu1 %2127 }
 0x4de   : > { %v2176_v57 = vmul.f32 %v2128_v40, %v3634_v0  ;;  %v2177_v32 = vmul.f32 %v2128_v40, %v3639_v6  ;;  %2388 = vmatprep.subr.bf16.mxu0 %v2273_v44  ;;  %v2143_v47 = vpop.permute.xlu0 %2142  ;;  %v2280_v0 = vpack.c.bf16 %v2180_v37, %v2178_v13 }
 0x4df   : > { %2389 = vmatpush1.bf16.msra.mxu0 %v2272_v1  ;;  %v2183_v63 = vmul.f32 %v2143_v47, %v3649_v59  ;;  %v2182_v46 = vmul.f32 %v2143_v47, %v3644_v16 }
 0x4e0   : > { %v2276_v20 = vpack.c.bf16 %v2176_v57, %v2174_v18  ;;  %v2277_v25 = vpack.c.bf16 %v2177_v32, %v2175_v54 }
 0x4e1   : > { %v2148_v31 = vpop.permute.xlu1 %2147 }
 0x4e2   : > { %v2185_v28 = vmul.f32 %v2148_v31, %v3676_v52  ;;  %2390 = vmatprep.subr.bf16.mxu0 %v2277_v25  ;;  %v2184_v6 = vmul.f32 %v2148_v31, %v3671_v21  ;;  %v1605_v19 = vpop.permute.xlu0 %1604  ;;  %v2187_v52 = vmul.f32 %v2153_v4, %v4127_v60 }
 0x4e3   : > { %2391 = vmatpush1.bf16.msra.mxu0 %v2276_v20  ;;  %v1632_v43 = vmul.f32 %v1605_v19, %v4128_v45  ;;  %v1633_v22 = vmul.f32 %v1605_v19, %v4130_v56 }
 0x4e4   : > { %2392 = vmatprep.subr.bf16.mxu0 %v2281_v48  ;;  %v2285_v29 = vpack.c.bf16 %v2185_v28, %v2183_v63  ;;  %v2284_v50 = vpack.c.bf16 %v2184_v6, %v2182_v46 }
 0x4e5   : > { %v2158_v39 = vpop.permute.xlu1 %2157 }
 0x4e6   : > { %v2189_v51 = vmul.f32 %v2158_v39, %v4126_v61  ;;  %v2188_v59 = vmul.f32 %v2158_v39, %v4129_v55  ;;  %v2163_v16 = vpop.permute.xlu0 %2162 }
 0x4e7   : > { %2393 = vmatpush1.bf16.msra.mxu0 %v2280_v0  ;;  %v2190_v58 = vmul.f32 %v2163_v16, %v3658_v42  ;;  %v2191_v33 = vmul.f32 %v2163_v16, %v3662_v2  ;;  %v2805_v42 = vld [vmem:[%s3968_s9 + $0x8] sm:$0xff]  }
 0x4e8   : > { %2394 = vmatprep.subr.bf16.mxu0 %v2285_v29  ;;  %v2289_v21 = vpack.c.bf16 %v2189_v51, %v2187_v52  ;;  %v2288_v38 = vpack.c.bf16 %v2188_v59, %v2186_v30 }
 0x4e9   : > { %v1610_v62 = vpop.permute.xlu1 %1609 }
 0x4ea   : > { %v1634_v3 = vmul.f32 %v1610_v62, %v4131_v36  ;;  %v1635_v26 = vmul.f32 %v1610_v62, %v4132_v7  ;;  %v2301_v2 = vpop.permute.xlu0 %2300 }
 0x4eb   : > { %2395 = vmatpush1.bf16.msra.mxu0 %v2284_v50 }
 0x4ec   : > { %v2290_v49 = vpack.c.bf16 %v1634_v3, %v1632_v43  ;;  %v2291_v53 = vpack.c.bf16 %v1635_v26, %v1633_v22  ;;  %2396 = vmatprep.subr.bf16.mxu0 %v2289_v21 }
 0x4ed   : > { %v2168_v23 = vpop.permute.xlu1 %2167 }
 0x4ee   : > { %v2192_v8 = vmul.f32 %v2168_v23, %v3680_v24  ;;  %v2193_v10 = vmul.f32 %v2168_v23, %v3684_v5  ;;  %2345 = vmatprep.subr.bf16.mxu1 %v2291_v53  ;;  %v2311_v15 = vpop.permute.xlu0 %2310 }
 0x4ef   : > { %2346 = vmatpush1.bf16.msra.mxu1 %v2290_v49  ;;  %2397 = vmatpush1.bf16.msra.mxu0 %v2288_v38 }
 0x4f0   : > { %v2292_v34 = vpack.c.bf16 %v2192_v8, %v2190_v58  ;;  %v2293_v12 = vpack.c.bf16 %v2193_v10, %v2191_v33 }
 0x4f1   : > { %v2306_v17 = vpop.permute.xlu1 %2305 }
 0x4f2   : > { %2591 = vmatmul.mubr.msk.bf16.vlgmr.msra.gmra.mrb[40].mxu1 %vm2328_vm5, %v2804_v9  ;;  %2398 = vmatprep.subr.bf16.mxu0 %v2293_v12 }
 0x4f3   : > { %2399 = vmatpush1.bf16.msra.mxu0 %v2292_v34  ;;  %2377 = vmatprep.mubr.bf16.mxu1 %v4044_v41 }
 0x4f5   : > { %v2316_v48 = vpop.permute.xlu1 %2315 }
 0x4f6   : > { %2593 = vmatmul.mubr.msk.bf16.vlgmr.msra.gmra.mrb[40].mxu0 %vm2328_vm5, %v2804_v9 }
 0x4f7   : > { %2430 = vmatprep.mubr.bf16.mxu0 %v4044_v41 }
 0x4fa   : > { %2592 = vmatmul.mubr.msk.bf16.gmra.mrb[44].mxu1 %vm2328_vm5, %v2805_v42 }
 0x4fe   : > { %2594 = vmatmul.mubr.msk.bf16.gmra.mrb[44].mxu0 %vm2328_vm5, %v2805_v42 }
 0x5c5   : > { %v2369_v24 = vpop.f32.mrb[40].mxu1 }
 0x5c6   : > { %v2370_v5 = vadd.f32 %v2369_v24, %v2301_v2  ;;  %v2371_v27 = vpop.f32.mrb[41].mxu1 }
 0x5c7   : > { %v2372_v14 = vadd.f32 %v2371_v27, %v2301_v2  ;;  %v2373_v41 = vpop.f32.mrb[42].mxu1 }
 0x5c8   : > { %2441 = vst [vmem:[%s3938_s15] sm:$0xff] %v2370_v5  ;;  %v2374_v4 = vadd.f32 %v2373_v41, %v2306_v17  ;;  %v2375_v1 = vpop.f32.mrb[43].mxu1 }
 0x5c9   : > { %2442 = vst [vmem:[%s3938_s15 + $0x8] sm:$0xff] %v2372_v14  ;;  %v2376_v44 = vadd.f32 %v2375_v1, %v2306_v17  ;;  %v2422_v35 = vpop.f32.mrb[40].mxu0 }
 0x5ca   : > { %2443 = vst [vmem:[%s3938_s15 + $0x10] sm:$0xff] %v2374_v4  ;;  %v2423_v40 = vadd.f32 %v2422_v35, %v2301_v2  ;;  %v2424_v18 = vpop.f32.mrb[41].mxu0 }
 0x5cb   : > { %2444 = vst [vmem:[%s3938_s15 + $0x18] sm:$0xff] %v2376_v44  ;;  %v2425_v54 = vadd.f32 %v2424_v18, %v2301_v2  ;;  %v2426_v57 = vpop.f32.mrb[42].mxu0 }
 0x5cc   : > { %2595 = vst [vmem:[%s3938_s15 + $0x40] sm:$0xff] %v2423_v40  ;;  %v2427_v32 = vadd.f32 %v2426_v57, %v2306_v17  ;;  %v2428_v47 = vpop.f32.mrb[43].mxu0 }
 0x5cd   : > { %2596 = vst [vmem:[%s3938_s15 + $0x48] sm:$0xff] %v2425_v54  ;;  %v2429_v20 = vadd.f32 %v2428_v47, %v2306_v17  ;;  %v2379_v25 = vpop.f32.mrb[44].mxu1 }
 0x5ce   : > { %2597 = vst [vmem:[%s3938_s15 + $0x50] sm:$0xff] %v2427_v32  ;;  %v2380_v37 = vadd.f32 %v2379_v25, %v2311_v15  ;;  %v2381_v31 = vpop.f32.mrb[45].mxu1 }
 0x5cf   : > { %2598 = vst [vmem:[%s3938_s15 + $0x58] sm:$0xff] %v2429_v20  ;;  %v2382_v28 = vadd.f32 %v2381_v31, %v2311_v15  ;;  %v2383_v13 = vpop.f32.mrb[46].mxu1 }
 0x5d0   : > { %2445 = vst [vmem:[%s3938_s15 + $0x20] sm:$0xff] %v2380_v37  ;;  %v2384_v63 = vadd.f32 %v2383_v13, %v2316_v48  ;;  %v2385_v0 = vpop.f32.mrb[47].mxu1 }
 0x5d1   : > { %2446 = vst [vmem:[%s3938_s15 + $0x28] sm:$0xff] %v2382_v28  ;;  %v2386_v6 = vadd.f32 %v2385_v0, %v2316_v48  ;;  %v2432_v19 = vpop.f32.mrb[44].mxu0 }
 0x5d2   : > { %2447 = vst [vmem:[%s3938_s15 + $0x30] sm:$0xff] %v2384_v63  ;;  %v2433_v39 = vadd.f32 %v2432_v19, %v2311_v15  ;;  %v2434_v29 = vpop.f32.mrb[45].mxu0 }
 0x5d3   : > { %2448 = vst [vmem:[%s3938_s15 + $0x38] sm:$0xff] %v2386_v6  ;;  %v2435_v61 = vadd.f32 %v2434_v29, %v2311_v15  ;;  %v2436_v51 = vpop.f32.mrb[46].mxu0 }
 0x5d4   : > { %2599 = vst [vmem:[%s3938_s15 + $0x60] sm:$0xff] %v2433_v39  ;;  %v2437_v46 = vadd.f32 %v2436_v51, %v2316_v48  ;;  %v2438_v60 = vpop.f32.mrb[47].mxu0 }
 0x5d5   : > { %2600 = vst [vmem:[%s3938_s15 + $0x68] sm:$0xff] %v2435_v61  ;;  %v2439_v52 = vadd.f32 %v2438_v60, %v2316_v48 }
 0x5d6   : > { %2601 = vst [vmem:[%s3938_s15 + $0x70] sm:$0xff] %v2437_v46 }
 0x5d7   : > { %2602 = vst [vmem:[%s3938_s15 + $0x78] sm:$0xff] %v2439_v52 }
 0x5d8 PF: > { %s21_s17 = sadd.s32 1, %s2892_s17  }
 0x5d9   : > { %p18_p4 = scmp.ge.s32.totalorder %s21_s17, 4  }
 0x5db   :  { %20 = sbr.rel (!%p18_p4) target bundleno = 1 (0x1), region = 96 }

</bundles_post_ra>
